<compile_context>
chip_gen: v6e
topology: v6e:2x2x1
jax: 0.10.0
libtpu: 0.0.40
codegen_flags: <defaults>
</compile_context>

<pallas_src>
import functools

import jax
import jax.numpy as jnp
from jax import lax
from jax.experimental import pallas as pl
from jax.experimental.pallas import tpu as pltpu


def _round_up(x: int, m: int) -> int:
    return ((x + m - 1) // m) * m


def _elsa_kernel(x_ref, e_ref, o_ref, acc_ref, *, matmul_dtype):
    # grid = (i, phase, k)
    # x_ref  : (tb, tk)  x[i_tile, k_tile]  (encode operand / residual)
    # e_ref  : (tk, Dp)  E[k_tile, :]       (encode weight / decode weight)
    # o_ref  : (tb, tk)  output tile        (written only in phase 1)
    # acc_ref: (tb, Dp)  f32 scratch, holds e = x[i_tile] @ E
    phase = pl.program_id(1)
    k = pl.program_id(2)

    @pl.when(jnp.logical_and(phase == 0, k == 0))
    def _init():
        acc_ref[...] = jnp.zeros_like(acc_ref)

    @pl.when(phase == 0)
    def _encode():
        # e += x[:, k_tile] @ E[k_tile, :]   (MXU, f32 accumulate)
        acc_ref[...] += jnp.dot(
            x_ref[...].astype(matmul_dtype),
            e_ref[...].astype(matmul_dtype),
            preferred_element_type=jnp.float32,
        )

    @pl.when(phase == 1)
    def _decode():
        # y[:, k_tile] = e @ E[k_tile, :].T   (contract on D; no E.T copy)
        y = lax.dot_general(
            acc_ref[...].astype(matmul_dtype),
            e_ref[...].astype(matmul_dtype),
            dimension_numbers=(((1,), (1,)), ((), ())),
            preferred_element_type=jnp.float32,
        )
        # residual + ReLU (VPU), lane-dense output write
        o_ref[...] = jnp.maximum(
            y - x_ref[...].astype(jnp.float32), 0.0).astype(o_ref.dtype)


def elsa_forward(x, encoder, *, tb=512, tk=512, matmul_dtype=jnp.float32):
    """ELSA forward: ReLU((x @ E) @ E.T - x).

    x:       [B, N] float32
    encoder: [N, D] float32 (rows assumed L2-normalized)
    returns: [B, N] float32
    """
    B, N = x.shape
    Nw, D = encoder.shape
    assert N == Nw, "x items dim must match encoder rows"

    # Clamp tiles for small problems, then pad to tile-aligned sizes.
    tb_eff = min(tb, _round_up(B, 8))
    tk_eff = min(tk, _round_up(N, 128))
    Bp = _round_up(B, tb_eff)
    Np = _round_up(N, tk_eff)
    Dp = _round_up(D, 128)  # lane-aligned embedding dim for MXU utilization

    xp = x if (Bp == B and Np == N) else jnp.pad(x, ((0, Bp - B), (0, Np - N)))
    ep = encoder if (Np == N and Dp == D) else jnp.pad(
        encoder, ((0, Np - N), (0, Dp - D)))

    grid = (Bp // tb_eff, 2, Np // tk_eff)

    itemsize = 4  # f32 HBM residency; bf16 cast (if any) happens in-kernel
    vmem_est = itemsize * (
        2 * tb_eff * tk_eff      # x tile, double-buffered
        + 2 * tk_eff * Dp        # E tile, double-buffered
        + 2 * tb_eff * tk_eff    # output tile, double-buffered
        + tb_eff * Dp            # f32 accumulator scratch
    )
    vmem_limit = int(min(max(2 * vmem_est, 16 * 1024 * 1024), 48 * 1024 * 1024))

    flops = 4 * Bp * Np * Dp  # 2*B*N*D encode + 2*B*N*D decode
    bytes_accessed = itemsize * (
        2 * Bp * Np                           # x read in both phases
        + 2 * (Bp // tb_eff) * Np * Dp        # E read twice per batch tile
        + Bp * Np                             # output write
    )

    kernel = functools.partial(_elsa_kernel, matmul_dtype=matmul_dtype)

    out = pl.pallas_call(
        kernel,
        out_shape=jax.ShapeDtypeStruct((Bp, Np), x.dtype),
        grid_spec=pltpu.PrefetchScalarGridSpec(
            num_scalar_prefetch=0,
            grid=grid,
            in_specs=[
                pl.BlockSpec((tb_eff, tk_eff), lambda i, p, k: (i, k)),  # x
                pl.BlockSpec((tk_eff, Dp), lambda i, p, k: (k, 0)),      # E
            ],
            # Output stays resident at (i, 0) during phase 0 (never written,
            # never flushed with garbage); written exactly once in phase 1.
            out_specs=pl.BlockSpec((tb_eff, tk_eff), lambda i, p, k: (i, p * k)),
            scratch_shapes=[pltpu.VMEM((tb_eff, Dp), jnp.float32)],
        ),
        compiler_params=pltpu.CompilerParams(
            dimension_semantics=("parallel", "arbitrary", "arbitrary"),
            vmem_limit_bytes=vmem_limit,
        ),
        cost_estimate=pl.CostEstimate(
            flops=flops, transcendentals=0, bytes_accessed=bytes_accessed),
    )(xp, ep)

    if Bp != B or Np != N:
        out = out[:B, :N]
    return out


def _l2_normalize(x, axis=-1):
    return x / jnp.linalg.norm(x, axis=axis, keepdims=True)


def make_encoder(key, input_dim, embedding_dim):
    # Kaiming-uniform init (fan_in = embedding_dim for a [input_dim, embedding_dim]
    # tensor), then row L2-normalization as in ELSA.__init__ / normalize_encoder().
    bound = jnp.sqrt(6.0 / embedding_dim)
    w = jax.random.uniform(
        key, (input_dim, embedding_dim), dtype=jnp.float32,
        minval=-bound, maxval=bound)
    return _l2_normalize(w, axis=-1)


if __name__ == "__main__":
    key = jax.random.PRNGKey(0)
    k_x, k_w = jax.random.split(key)

    batch = 200          # exercises batch-tile clamping (tb_eff = 200)
    input_dim = 500      # number of items; exercises item padding (Np = 512)
    embedding_dim = 96   # latent dim; padded to 128 inside the wrapper

    x = jax.random.uniform(k_x, (batch, input_dim), dtype=jnp.float32)
    encoder = make_encoder(k_w, input_dim, embedding_dim)

    # Pure-JAX reference of the same forward pass.
    e_ref = jnp.dot(x, encoder, precision=lax.Precision.HIGHEST)
    y_ref = jnp.dot(e_ref, encoder.T, precision=lax.Precision.HIGHEST)
    ref = jnp.maximum(y_ref - x, 0.0)

    # f32 matmul path (tight tolerance).
    out_f32 = jax.block_until_ready(
        elsa_forward(x, encoder, matmul_dtype=jnp.float32))
    assert out_f32.shape == (batch, input_dim)
    assert jnp.allclose(out_f32, ref, atol=1e-4, rtol=1e-4)

    # bf16-input matmul path (v6e/v7x MXU fast path), f32 accumulate — looser.
    out_bf16 = jax.block_until_ready(
        elsa_forward(x, encoder, matmul_dtype=jnp.bfloat16))
    assert out_bf16.shape == (batch, input_dim)
    assert jnp.allclose(out_bf16, ref, atol=1e-1, rtol=1e-1)

    # TODO(synk): training step (optimizer, grad projection in normalize_encoder)
    # and recommend()'s top-k are outside the forward pass and not kernelized.
    print("KERNEL_OK")
</pallas_src>

<mosaic_0001>
module attributes {stable_mosaic.version = 11 : i64} {
  func.func @_elsa_kernel(%arg0: i32, %arg1: i32, %arg2: i32, %arg3: memref<200x512xf32, #tpu.memory_space<vmem>>, %arg4: memref<512x128xf32, #tpu.memory_space<vmem>>, %arg5: memref<200x512xf32, #tpu.memory_space<vmem>>, %arg6: memref<200x128xf32, #tpu.memory_space<vmem>>) attributes {dimension_semantics = [#tpu.dimension_semantics<parallel>, #tpu.dimension_semantics<arbitrary>, #tpu.dimension_semantics<arbitrary>], iteration_bounds = array<i64: 1, 2, 1>, scalar_prefetch = 0 : i64, scratch_operands = 1 : i64, tpu.core_type = #tpu.core_type<tc>, window_params = [{transform_indices = @transform_0, window_bounds = array<i64: 200, 512>}, {transform_indices = @transform_1, window_bounds = array<i64: 512, 128>}, {transform_indices = @transform_2, window_bounds = array<i64: 200, 512>}]} {
    %c0_i32 = arith.constant 0 : i32
    %0 = arith.cmpi eq, %arg1, %c0_i32 : i32
    %c0_i32_0 = arith.constant 0 : i32
    %1 = arith.cmpi eq, %arg2, %c0_i32_0 : i32
    %2 = arith.andi %0, %1 : i1
    %3 = arith.extui %2 : i1 to i32
    %c0_i32_1 = arith.constant 0 : i32
    %4 = arith.cmpi ne, %3, %c0_i32_1 : i32
    scf.if %4 {
      %cst = arith.constant 0.000000e+00 : f32
      %11 = vector.broadcast %cst : f32 to vector<200x128xf32>
      %c0 = arith.constant 0 : index
      %c0_5 = arith.constant 0 : index
      %12 = vector.load %arg6[%c0, %c0_5] : memref<200x128xf32, #tpu.memory_space<vmem>>, vector<200x128xf32>
      tpu.vector_store %arg6[%c0, %c0_5], %11 {strides = array<i32>} : memref<200x128xf32, #tpu.memory_space<vmem>>, vector<200x128xf32>,
    } else {
    }
    %c0_i32_2 = arith.constant 0 : i32
    %5 = arith.cmpi eq, %arg1, %c0_i32_2 : i32
    %6 = arith.extui %5 : i1 to i32
    %c0_i32_3 = arith.constant 0 : i32
    %7 = arith.cmpi ne, %6, %c0_i32_3 : i32
    scf.if %7 {
      %c0 = arith.constant 0 : index
      %c0_5 = arith.constant 0 : index
      %11 = vector.load %arg6[%c0, %c0_5] : memref<200x128xf32, #tpu.memory_space<vmem>>, vector<200x128xf32>
      %c0_6 = arith.constant 0 : index
      %c0_7 = arith.constant 0 : index
      %12 = vector.load %arg3[%c0_6, %c0_7] : memref<200x512xf32, #tpu.memory_space<vmem>>, vector<200x512xf32>
      %c0_8 = arith.constant 0 : index
      %c0_9 = arith.constant 0 : index
      %13 = vector.load %arg4[%c0_8, %c0_9] : memref<512x128xf32, #tpu.memory_space<vmem>>, vector<512x128xf32>
      %cst = arith.constant dense<0.000000e+00> : vector<200x128xf32>
      %14 = tpu.matmul %12, %13, %cst {dimension_numbers = #tpu.dot_dimension_numbers<[1], [0], [0], [1], [0, 0, 1, 1], [], []>} : vector<200x512xf32>, vector<512x128xf32>, vector<200x128xf32> -> vector<200x128xf32>
      %15 = arith.addf %11, %14 : vector<200x128xf32>
      %c0_10 = arith.constant 0 : index
      %c0_11 = arith.constant 0 : index
      %16 = vector.load %arg6[%c0_10, %c0_11] : memref<200x128xf32, #tpu.memory_space<vmem>>, vector<200x128xf32>
      tpu.vector_store %arg6[%c0_10, %c0_11], %15 {strides = array<i32>} : memref<200x128xf32, #tpu.memory_space<vmem>>, vector<200x128xf32>,
    } else {
    }
    %c1_i32 = arith.constant 1 : i32
    %8 = arith.cmpi eq, %arg1, %c1_i32 : i32
    %9 = arith.extui %8 : i1 to i32
    %c0_i32_4 = arith.constant 0 : i32
    %10 = arith.cmpi ne, %9, %c0_i32_4 : i32
    scf.if %10 {
      %c0 = arith.constant 0 : index
      %c0_5 = arith.constant 0 : index
      %11 = vector.load %arg6[%c0, %c0_5] : memref<200x128xf32, #tpu.memory_space<vmem>>, vector<200x128xf32>
      %c0_6 = arith.constant 0 : index
      %c0_7 = arith.constant 0 : index
      %12 = vector.load %arg4[%c0_6, %c0_7] : memref<512x128xf32, #tpu.memory_space<vmem>>, vector<512x128xf32>
      %cst = arith.constant dense<0.000000e+00> : vector<200x512xf32>
      %13 = tpu.matmul %11, %12, %cst {dimension_numbers = #tpu.dot_dimension_numbers<[1], [1], [0], [0], [0, 0, 1, 0], [], []>} : vector<200x128xf32>, vector<512x128xf32>, vector<200x512xf32> -> vector<200x512xf32>
      %c0_8 = arith.constant 0 : index
      %c0_9 = arith.constant 0 : index
      %14 = vector.load %arg3[%c0_8, %c0_9] : memref<200x512xf32, #tpu.memory_space<vmem>>, vector<200x512xf32>
      %15 = arith.subf %13, %14 : vector<200x512xf32>
      %cst_10 = arith.constant 0.000000e+00 : f32
      %16 = vector.broadcast %cst_10 : f32 to vector<200x512xf32>
      %17 = arith.maximumf %15, %16 : vector<200x512xf32>
      %c0_11 = arith.constant 0 : index
      %c0_12 = arith.constant 0 : index
      %18 = vector.load %arg5[%c0_11, %c0_12] : memref<200x512xf32, #tpu.memory_space<vmem>>, vector<200x512xf32>
      tpu.vector_store %arg5[%c0_11, %c0_12], %17 {strides = array<i32>} : memref<200x512xf32, #tpu.memory_space<vmem>>, vector<200x512xf32>,
    } else {
    }
    return
  }
  func.func @transform_0(%arg0: i32, %arg1: i32, %arg2: i32) -> (i32, i32) {
    %c0_i32 = arith.constant 0 : i32
    return %arg0, %arg2 : i32, i32
  }
  func.func @transform_1(%arg0: i32, %arg1: i32, %arg2: i32) -> (i32, i32) {
    %c0_i32 = arith.constant 0 : i32
    %c0_i32_0 = arith.constant 0 : i32
    return %arg2, %c0_i32 : i32, i32
  }
  func.func @transform_2(%arg0: i32, %arg1: i32, %arg2: i32) -> (i32, i32) {
    %0 = arith.muli %arg1, %arg2 : i32
    %c0_i32 = arith.constant 0 : i32
    return %arg0, %0 : i32, i32
  }
}

</mosaic_0001>

<bundles_post_ra>
// kernel: tpu_custom_call.1
= control target key start
LH: loop header
LB: loop body
LE: loop exit
PB: predicated region body
PF: predicated region fallthrough
CT: control target
= control target key end

     0   :  { %7 = vsyncpa [#allocation4], 0  ;;  %s2438_s0 = inlined_call_operand.hbm [shape: f32[200,512], index: 0, kind: input, shape index: {}]   ;;  %s2439_s1 = inlined_call_operand.hbm [shape: f32[512,128], index: 1, kind: input, shape index: {}]   ;;  %s2440_s2 = inlined_call_operand.hbm [shape: f32[200,512], index: 2, kind: output, shape index: {}]  }
   0x1   :  { %8 = vsyncpa [#allocation7], 0 }
   0x2   :  { %9 = vsyncpa [#allocation5], 0 }
   0x3   :  { %11 = vsyncpa [#allocation5 + $0x1], 0  ;;  %s2272_s9 = smov 0   ;;  %s2274_s10 = smov 0  }
   0x4   :  { %s2276_s11 = smov 0  }
   0x5 LB: > { %s1889_s12 = sadd.s32 4294967295, %s2244_s11   ;;  %s1890_s13 = sadd.s32 4294967294, %s2244_s11   ;;  %s2244_s11 = sphi %s2276_s11, %s17_s11   ;;  %s2240_s10 = sphi %s2274_s10, %s2446_s10   ;;  %s2236_s9 = sphi %s2272_s9, %s2445_s9  }
   0x6   : > { %s32_s14 = sadd.s32 1, %s2240_s10  ;;  %p1891_p0 = scmp.ge.s32.totalorder %s2244_s11, 1 }
   0x7   : > { %p34_p1 = scmp.ge.s32.totalorder %s32_s14, 2  ;;  %p125_p2 = scmp.lt.s32.totalorder %s2244_s11, 3 }
   0x8   : > { %p2294_p3 = scmp.eq.s32.totalorder %s1889_s12, 0  ;;  %s2246_s17 = smov [#allocation3]  }
   0x9   : > { %s2448_s14 = smov (%p34_p1, %s32_s14), 0  ;;  %p2300_p4 = pnand %p1891_p0, %p125_p2 }
   0xa   : > { %s143_s18 = sshll.u32 %s2246_s17, 4  ;;  %s2247_s20 = smov [#allocation6]   ;;  %s144_s18 = int_to_ptr.vmem [resolvable:$true] %s143_s18 }
   0xb   : > { %p2081_p5 = pneg %p2300_p4  ;;  %s159_s21 = sshll.u32 %s2247_s20, 4  ;;  %s160_s21 = int_to_ptr.vmem [resolvable:$true] %s159_s21 }
   0xc   : > { %s2145_s22 = scalar_lea.vmem %s144_s18, 12800  ;;  %p2153_p11 = scmp.lt.s32.totalorder %s144_s18, %s144_s18 }
   0xd   : > { %p2308_p6 = pnand %p2294_p3, %p2081_p5  ;;  %p2146_p8 = scmp.ne.s32.totalorder %s144_s18, %s2145_s22 }
   0xe   : > { %p2154_p12 = scmp.lt.s32.totalorder %s2145_s22, %s2145_s22 }
   0xf   : > { %p2136_p7 = pneg %p2308_p6 }
  0x10   : > { %p2155_p13 = por %p2154_p12, %p2153_p11 }
  0x11   : > { %p2148_p9 = pnand %p2146_p8, %p2136_p7 }
  0x13   : > { %p2149_p10 = pneg %p2148_p9 }
  0x15   : > { %p2156_p0 = pnand %p2155_p13, %p2149_p10 }
  0x17   : > { %2159 = shalt.err (!%p2156_p0)
}
  0x18   : > { %s2248_s23 = smov 512   ;;  %s2249_s24 = smov 32  }
  0x19   : > { %2084 = dma.hbm_to_vmem [thread:$0]  (!%p2308_p6), %s2438_s0, 12800, %s144_s18, [#allocation4], %s2248_s23, %s2248_s23, %s2249_s24  }
  0x1a   : > { %s2171_s27 = scalar_lea.vmem %s160_s21, 8192  ;;  %p2179_p8 = scmp.lt.s32.totalorder %s160_s21, %s160_s21 }
  0x1b   : > { %p2172_p1 = scmp.ne.s32.totalorder %s160_s21, %s2171_s27  ;;  %p2180_p9 = scmp.lt.s32.totalorder %s2171_s27, %s2171_s27 }
  0x1d   : > { %p2174_p2 = pnand %p2172_p1, %p2136_p7  ;;  %p2181_p11 = por %p2180_p9, %p2179_p8 }
  0x1f   : > { %p2175_p5 = pneg %p2174_p2 }
  0x21   : > { %p2182_p10 = pnand %p2181_p11, %p2175_p5 }
  0x23   : > { %2185 = shalt.err (!%p2182_p10)
}
  0x24   : > { %s2250_s28 = smov 128   ;;  %s2251_s29 = smov 8  }
  0x25   : > { %2087 = dma.hbm_to_vmem [thread:$0]  (!%p2308_p6), %s2439_s1, 8192, %s160_s21, [#allocation7], %s2250_s28, %s2250_s28, %s2251_s29  }
  0x26   : > { %175 = sbr.rel (%p2300_p4) target bundleno = 812 (0x32c), region = 28 }
  0x2b   : > { %2223 = dma.done.wait (%p2294_p3), [#allocation4], 12800  }
  0x2c   : > { %2225 = vsyncadd (%p2294_p3), [#allocation4], 4294954496 }
  0x2d   : > { %2227 = dma.done.wait (%p2294_p3), [#allocation7], 8192  }
  0x2e   : > { %2229 = vsyncadd (%p2294_p3), [#allocation7], 4294959104  ;;  %p202_p7 = scmp.eq.s32.totalorder %s2236_s9, 0 }
  0x2f   : > { %v2252_v0 = vmov (%p202_p7), 0.0  }
  0x30   : > { %207 = sbr.rel (!%p202_p7) target bundleno = 61 (0x3d), region = 40  ;;  %208 = vst [vmem:[#allocation2 + $0xb0] sm:$0xff] (%p202_p7), %v2252_v0  ;;  %209 = vst [vmem:[#allocation2] sm:$0xff] (%p202_p7), %v2252_v0 }
  0x31   : > { %210 = vst [vmem:[#allocation2 + $0x10] sm:$0xff] (%p202_p7), %v2252_v0  ;;  %211 = vst [vmem:[#allocation2 + $0x48] sm:$0xff] (%p202_p7), %v2252_v0 }
  0x32   : > { %212 = vst [vmem:[#allocation2 + $0x60] sm:$0xff] (%p202_p7), %v2252_v0  ;;  %213 = vst [vmem:[#allocation2 + $0x28] sm:$0xff] (%p202_p7), %v2252_v0 }
  0x33   : > { %214 = vst [vmem:[#allocation2 + $0x40] sm:$0xff] (%p202_p7), %v2252_v0  ;;  %215 = vst [vmem:[#allocation2 + $0x78] sm:$0xff] (%p202_p7), %v2252_v0 }
  0x34   : > { %216 = vst [vmem:[#allocation2 + $0x80] sm:$0xff] (%p202_p7), %v2252_v0  ;;  %217 = vst [vmem:[#allocation2 + $0x88] sm:$0xff] (%p202_p7), %v2252_v0 }
  0x35   : > { %218 = vst [vmem:[#allocation2 + $0xb8] sm:$0xff] %v2252_v0  ;;  %219 = vst [vmem:[#allocation2 + $0x70] sm:$0xff] %v2252_v0 }
  0x36   : > { %220 = vst [vmem:[#allocation2 + $0x18] sm:$0xff] %v2252_v0  ;;  %221 = vst [vmem:[#allocation2 + $0x68] sm:$0xff] %v2252_v0 }
  0x37   : > { %222 = vst [vmem:[#allocation2 + $0x98] sm:$0xff] %v2252_v0  ;;  %223 = vst [vmem:[#allocation2 + $0xa0] sm:$0xff] %v2252_v0 }
  0x38   : > { %224 = vst [vmem:[#allocation2 + $0x20] sm:$0xff] %v2252_v0  ;;  %225 = vst [vmem:[#allocation2 + $0x30] sm:$0xff] %v2252_v0 }
  0x39   : > { %226 = vst [vmem:[#allocation2 + $0x90] sm:$0xff] %v2252_v0  ;;  %227 = vst [vmem:[#allocation2 + $0x38] sm:$0xff] %v2252_v0 }
  0x3a   : > { %228 = vst [vmem:[#allocation2 + $0x58] sm:$0xff] %v2252_v0  ;;  %229 = vst [vmem:[#allocation2 + $0x50] sm:$0xff] %v2252_v0 }
  0x3b   : > { %230 = vst [vmem:[#allocation2 + $0x8] sm:$0xff] %v2252_v0  ;;  %231 = vst [vmem:[#allocation2 + $0xa8] sm:$0xff] %v2252_v0 }
  0x3c   : > { %232 = vst [vmem:[#allocation2 + $0xc0] sm:$0xff] %v2252_v0 }
  0x3d PF: > { %p1898_p3 = scmp.ne.s32.totalorder %s2236_s9, 0 }
  0x3f   : > { %235 = sbr.rel (%p1898_p3) target bundleno = 428 (0x1ac), region = 44 }
  0x44   : > { %v376_v1 = vld [vmem:[#allocation6 + $0x78] sm:$0xff]  ;;  %v2253_v3 = vmov 0.0   ;;  %v375_v4 = vld [vmem:[#allocation6 + $0x70] sm:$0xff]  ;;  %v374_v6 = vld [vmem:[#allocation6 + $0x68] sm:$0xff] }
  0x45   : > { %v408_v2 = vld [vmem:[#allocation6 + $0x178] sm:$0xff]  ;;  %425 = vmatprep.subr.mxu0 %v2253_v3  ;;  %615 = vmatprep.subr.mxu1 %v2253_v3  ;;  %v407_v5 = vld [vmem:[#allocation6 + $0x170] sm:$0xff]  ;;  %v406_v7 = vld [vmem:[#allocation6 + $0x168] sm:$0xff] }
  0x46   : > { %426 = vmatpush1.msra.mxu0 %v376_v1  ;;  %616 = vmatpush1.msra.mxu1 %v408_v2  ;;  %v373_v8 = vld [vmem:[#allocation6 + $0x60] sm:$0xff]  ;;  %v372_v10 = vld [vmem:[#allocation6 + $0x58] sm:$0xff]  ;;  %v371_v12 = vld [vmem:[#allocation6 + $0x50] sm:$0xff] }
  0x47   : > { %427 = vmatprep.subr.mxu0 %v2253_v3  ;;  %617 = vmatprep.subr.mxu1 %v2253_v3  ;;  %v405_v9 = vld [vmem:[#allocation6 + $0x160] sm:$0xff]  ;;  %v404_v11 = vld [vmem:[#allocation6 + $0x158] sm:$0xff]  ;;  %v403_v13 = vld [vmem:[#allocation6 + $0x150] sm:$0xff] }
  0x48   : > { %428 = vmatpush1.msra.mxu0 %v375_v4  ;;  %618 = vmatpush1.msra.mxu1 %v407_v5  ;;  %v370_v14 = vld [vmem:[#allocation6 + $0x48] sm:$0xff]  ;;  %v369_v16 = vld [vmem:[#allocation6 + $0x40] sm:$0xff]  ;;  %v368_v18 = vld [vmem:[#allocation6 + $0x38] sm:$0xff] }
  0x49   : > { %429 = vmatprep.subr.mxu0 %v2253_v3  ;;  %619 = vmatprep.subr.mxu1 %v2253_v3  ;;  %v402_v15 = vld [vmem:[#allocation6 + $0x148] sm:$0xff]  ;;  %v401_v17 = vld [vmem:[#allocation6 + $0x140] sm:$0xff]  ;;  %v400_v19 = vld [vmem:[#allocation6 + $0x138] sm:$0xff] }
  0x4a   : > { %430 = vmatpush1.msra.mxu0 %v374_v6  ;;  %620 = vmatpush1.msra.mxu1 %v406_v7  ;;  %v367_v20 = vld [vmem:[#allocation6 + $0x30] sm:$0xff]  ;;  %v366_v22 = vld [vmem:[#allocation6 + $0x28] sm:$0xff]  ;;  %v365_v24 = vld [vmem:[#allocation6 + $0x20] sm:$0xff] }
  0x4b   : > { %431 = vmatprep.subr.mxu0 %v2253_v3  ;;  %621 = vmatprep.subr.mxu1 %v2253_v3  ;;  %v399_v21 = vld [vmem:[#allocation6 + $0x130] sm:$0xff]  ;;  %v398_v23 = vld [vmem:[#allocation6 + $0x128] sm:$0xff]  ;;  %v397_v25 = vld [vmem:[#allocation6 + $0x120] sm:$0xff] }
  0x4c   : > { %432 = vmatpush1.msra.mxu0 %v373_v8  ;;  %622 = vmatpush1.msra.mxu1 %v405_v9  ;;  %v364_v26 = vld [vmem:[#allocation6 + $0x18] sm:$0xff]  ;;  %v363_v28 = vld [vmem:[#allocation6 + $0x10] sm:$0xff]  ;;  %v362_v30 = vld [vmem:[#allocation6 + $0x8] sm:$0xff] }
  0x4d   : > { %433 = vmatprep.subr.mxu0 %v2253_v3  ;;  %623 = vmatprep.subr.mxu1 %v2253_v3  ;;  %v396_v27 = vld [vmem:[#allocation6 + $0x118] sm:$0xff]  ;;  %v395_v29 = vld [vmem:[#allocation6 + $0x110] sm:$0xff]  ;;  %v394_v31 = vld [vmem:[#allocation6 + $0x108] sm:$0xff] }
  0x4e   : > { %434 = vmatpush1.msra.mxu0 %v372_v10  ;;  %624 = vmatpush1.msra.mxu1 %v404_v11  ;;  %v361_v32 = vld [vmem:[#allocation6] sm:$0xff]  ;;  %v392_v34 = vld [vmem:[#allocation6 + $0xf8] sm:$0xff]  ;;  %v391_v36 = vld [vmem:[#allocation6 + $0xf0] sm:$0xff] }
  0x4f   : > { %435 = vmatprep.subr.mxu0 %v2253_v3  ;;  %625 = vmatprep.subr.mxu1 %v2253_v3  ;;  %v393_v33 = vld [vmem:[#allocation6 + $0x100] sm:$0xff]  ;;  %v424_v35 = vld [vmem:[#allocation6 + $0x1f8] sm:$0xff]  ;;  %v423_v37 = vld [vmem:[#allocation6 + $0x1f0] sm:$0xff] }
  0x50   : > { %436 = vmatpush1.msra.mxu0 %v371_v12  ;;  %626 = vmatpush1.msra.mxu1 %v403_v13  ;;  %v390_v38 = vld [vmem:[#allocation6 + $0xe8] sm:$0xff]  ;;  %v389_v40 = vld [vmem:[#allocation6 + $0xe0] sm:$0xff]  ;;  %v388_v42 = vld [vmem:[#allocation6 + $0xd8] sm:$0xff] }
  0x51   : > { %437 = vmatprep.subr.mxu0 %v2253_v3  ;;  %627 = vmatprep.subr.mxu1 %v2253_v3  ;;  %v422_v39 = vld [vmem:[#allocation6 + $0x1e8] sm:$0xff]  ;;  %v421_v41 = vld [vmem:[#allocation6 + $0x1e0] sm:$0xff]  ;;  %v420_v43 = vld [vmem:[#allocation6 + $0x1d8] sm:$0xff] }
  0x52   : > { %438 = vmatpush1.msra.mxu0 %v370_v14  ;;  %628 = vmatpush1.msra.mxu1 %v402_v15  ;;  %v387_v44 = vld [vmem:[#allocation6 + $0xd0] sm:$0xff]  ;;  %v386_v46 = vld [vmem:[#allocation6 + $0xc8] sm:$0xff]  ;;  %v385_v48 = vld [vmem:[#allocation6 + $0xc0] sm:$0xff] }
  0x53   : > { %439 = vmatprep.subr.mxu0 %v2253_v3  ;;  %629 = vmatprep.subr.mxu1 %v2253_v3  ;;  %v419_v45 = vld [vmem:[#allocation6 + $0x1d0] sm:$0xff]  ;;  %v418_v47 = vld [vmem:[#allocation6 + $0x1c8] sm:$0xff]  ;;  %v417_v49 = vld [vmem:[#allocation6 + $0x1c0] sm:$0xff] }
  0x54   : > { %440 = vmatpush1.msra.mxu0 %v369_v16  ;;  %630 = vmatpush1.msra.mxu1 %v401_v17  ;;  %v384_v50 = vld [vmem:[#allocation6 + $0xb8] sm:$0xff]  ;;  %v383_v52 = vld [vmem:[#allocation6 + $0xb0] sm:$0xff]  ;;  %v382_v54 = vld [vmem:[#allocation6 + $0xa8] sm:$0xff] }
  0x55   : > { %441 = vmatprep.subr.mxu0 %v2253_v3  ;;  %631 = vmatprep.subr.mxu1 %v2253_v3  ;;  %v416_v51 = vld [vmem:[#allocation6 + $0x1b8] sm:$0xff]  ;;  %v415_v53 = vld [vmem:[#allocation6 + $0x1b0] sm:$0xff]  ;;  %v414_v55 = vld [vmem:[#allocation6 + $0x1a8] sm:$0xff] }
  0x56   : > { %442 = vmatpush1.msra.mxu0 %v368_v18  ;;  %632 = vmatpush1.msra.mxu1 %v400_v19  ;;  %v381_v56 = vld [vmem:[#allocation6 + $0xa0] sm:$0xff]  ;;  %v380_v58 = vld [vmem:[#allocation6 + $0x98] sm:$0xff]  ;;  %v379_v60 = vld [vmem:[#allocation6 + $0x90] sm:$0xff] }
  0x57   : > { %443 = vmatprep.subr.mxu0 %v2253_v3  ;;  %633 = vmatprep.subr.mxu1 %v2253_v3  ;;  %v413_v57 = vld [vmem:[#allocation6 + $0x1a0] sm:$0xff]  ;;  %v412_v59 = vld [vmem:[#allocation6 + $0x198] sm:$0xff]  ;;  %v411_v61 = vld [vmem:[#allocation6 + $0x190] sm:$0xff] }
  0x58   : > { %444 = vmatpush1.msra.mxu0 %v367_v20  ;;  %634 = vmatpush1.msra.mxu1 %v399_v21  ;;  %v378_v62 = vld [vmem:[#allocation6 + $0x88] sm:$0xff]  ;;  %v377_v0 = vld [vmem:[#allocation6 + $0x80] sm:$0xff]  ;;  %v264_v4 = vld [vmem:[#allocation3 + $0x18] sm:$0xff] }
  0x59   : > { %445 = vmatprep.subr.mxu0 %v2253_v3  ;;  %635 = vmatprep.subr.mxu1 %v2253_v3  ;;  %v410_v63 = vld [vmem:[#allocation6 + $0x188] sm:$0xff]  ;;  %v409_v2 = vld [vmem:[#allocation6 + $0x180] sm:$0xff]  ;;  %v263_v6 = vld [vmem:[#allocation3 + $0x10] sm:$0xff] }
  0x5a   : > { %446 = vmatpush1.msra.mxu0 %v366_v22  ;;  %636 = vmatpush1.msra.mxu1 %v398_v23  ;;  %v262_v1 = vld [vmem:[#allocation3 + $0x8] sm:$0xff]  ;;  %v261_v5 = vld [vmem:[#allocation3] sm:$0xff]  ;;  %v268_v8 = vld [vmem:[#allocation3 + $0x38] sm:$0xff] }
  0x5b   : > { %447 = vmatprep.subr.mxu0 %v2253_v3  ;;  %637 = vmatprep.subr.mxu1 %v2253_v3  ;;  %v266_v7 = vld [vmem:[#allocation3 + $0x28] sm:$0xff]  ;;  %v265_v9 = vld [vmem:[#allocation3 + $0x20] sm:$0xff]  ;;  %v267_v10 = vld [vmem:[#allocation3 + $0x30] sm:$0xff] }
  0x5c   : > { %448 = vmatpush1.msra.mxu0 %v365_v24  ;;  %638 = vmatpush1.msra.mxu1 %v397_v25  ;;  %v270_v11 = vld [vmem:[#allocation3 + $0x48] sm:$0xff]  ;;  %v272_v12 = vld [vmem:[#allocation3 + $0x58] sm:$0xff]  ;;  %v271_v13 = vld [vmem:[#allocation3 + $0x50] sm:$0xff] }
  0x5d   : > { %449 = vmatprep.subr.mxu0 %v2253_v3  ;;  %639 = vmatprep.subr.mxu1 %v2253_v3  ;;  %v274_v14 = vld [vmem:[#allocation3 + $0x68] sm:$0xff]  ;;  %v276_v15 = vld [vmem:[#allocation3 + $0x78] sm:$0xff]  ;;  %v273_v16 = vld [vmem:[#allocation3 + $0x60] sm:$0xff] }
  0x5e   : > { %450 = vmatpush1.msra.mxu0 %v364_v26  ;;  %640 = vmatpush1.msra.mxu1 %v396_v27  ;;  %v275_v17 = vld [vmem:[#allocation3 + $0x70] sm:$0xff]  ;;  %v278_v18 = vld [vmem:[#allocation3 + $0x88] sm:$0xff]  ;;  %v280_v19 = vld [vmem:[#allocation3 + $0x98] sm:$0xff] }
  0x5f   : > { %451 = vmatprep.subr.mxu0 %v2253_v3  ;;  %641 = vmatprep.subr.mxu1 %v2253_v3  ;;  %v277_v20 = vld [vmem:[#allocation3 + $0x80] sm:$0xff]  ;;  %v279_v21 = vld [vmem:[#allocation3 + $0x90] sm:$0xff]  ;;  %v282_v22 = vld [vmem:[#allocation3 + $0xa8] sm:$0xff] }
  0x60   : > { %452 = vmatpush1.msra.mxu0 %v363_v28  ;;  %642 = vmatpush1.msra.mxu1 %v395_v29  ;;  %v284_v23 = vld [vmem:[#allocation3 + $0xb8] sm:$0xff]  ;;  %v281_v24 = vld [vmem:[#allocation3 + $0xa0] sm:$0xff]  ;;  %v283_v25 = vld [vmem:[#allocation3 + $0xb0] sm:$0xff] }
  0x61   : > { %453 = vmatprep.subr.mxu0 %v2253_v3  ;;  %643 = vmatprep.subr.mxu1 %v2253_v3  ;;  %v286_v26 = vld [vmem:[#allocation3 + $0xc8] sm:$0xff]  ;;  %v288_v27 = vld [vmem:[#allocation3 + $0xd8] sm:$0xff]  ;;  %v285_v28 = vld [vmem:[#allocation3 + $0xc0] sm:$0xff] }
  0x62   : > { %454 = vmatpush1.msra.mxu0 %v362_v30  ;;  %644 = vmatpush1.msra.mxu1 %v394_v31  ;;  %v287_v29 = vld [vmem:[#allocation3 + $0xd0] sm:$0xff]  ;;  %v290_v30 = vld [vmem:[#allocation3 + $0xe8] sm:$0xff]  ;;  %v292_v31 = vld [vmem:[#allocation3 + $0xf8] sm:$0xff] }
  0x63   : > { %455 = vmatprep.subr.mxu0 %v2253_v3  ;;  %645 = vmatprep.subr.mxu1 %v2253_v3 }
  0x64   : > { %456 = vmatpush1.msra.mxu0 %v361_v32  ;;  %646 = vmatpush1.msra.mxu1 %v393_v33  ;;  %v289_v32 = vld [vmem:[#allocation3 + $0xe0] sm:$0xff]  ;;  %v291_v33 = vld [vmem:[#allocation3 + $0xf0] sm:$0xff] }
  0x65   : > { %457 = vmatprep.subr.mxu0 %v2253_v3  ;;  %647 = vmatprep.subr.mxu1 %v2253_v3 }
  0x66   : > { %458 = vmatpush2.msra.mxu0 %v392_v34  ;;  %648 = vmatpush2.msra.mxu1 %v424_v35  ;;  %v294_v34 = vld [vmem:[#allocation3 + $0x108] sm:$0xff]  ;;  %v296_v35 = vld [vmem:[#allocation3 + $0x118] sm:$0xff] }
  0x67   : > { %459 = vmatprep.subr.mxu0 %v2253_v3  ;;  %649 = vmatprep.subr.mxu1 %v2253_v3 }
  0x68   : > { %460 = vmatpush2.msra.mxu0 %v391_v36  ;;  %650 = vmatpush2.msra.mxu1 %v423_v37  ;;  %v293_v36 = vld [vmem:[#allocation3 + $0x100] sm:$0xff]  ;;  %v295_v37 = vld [vmem:[#allocation3 + $0x110] sm:$0xff] }
  0x69   : > { %461 = vmatprep.subr.mxu0 %v2253_v3  ;;  %651 = vmatprep.subr.mxu1 %v2253_v3 }
  0x6a   : > { %462 = vmatpush2.msra.mxu0 %v390_v38  ;;  %652 = vmatpush2.msra.mxu1 %v422_v39  ;;  %v298_v38 = vld [vmem:[#allocation3 + $0x128] sm:$0xff]  ;;  %v300_v39 = vld [vmem:[#allocation3 + $0x138] sm:$0xff] }
  0x6b   : > { %463 = vmatprep.subr.mxu0 %v2253_v3  ;;  %653 = vmatprep.subr.mxu1 %v2253_v3 }
  0x6c   : > { %464 = vmatpush2.msra.mxu0 %v389_v40  ;;  %654 = vmatpush2.msra.mxu1 %v421_v41  ;;  %v297_v40 = vld [vmem:[#allocation3 + $0x120] sm:$0xff]  ;;  %v299_v41 = vld [vmem:[#allocation3 + $0x130] sm:$0xff] }
  0x6d   : > { %465 = vmatprep.subr.mxu0 %v2253_v3  ;;  %655 = vmatprep.subr.mxu1 %v2253_v3 }
  0x6e   : > { %466 = vmatpush2.msra.mxu0 %v388_v42  ;;  %656 = vmatpush2.msra.mxu1 %v420_v43  ;;  %v302_v42 = vld [vmem:[#allocation3 + $0x148] sm:$0xff]  ;;  %v304_v43 = vld [vmem:[#allocation3 + $0x158] sm:$0xff] }
  0x6f   : > { %467 = vmatprep.subr.mxu0 %v2253_v3  ;;  %657 = vmatprep.subr.mxu1 %v2253_v3 }
  0x70   : > { %468 = vmatpush2.msra.mxu0 %v387_v44  ;;  %658 = vmatpush2.msra.mxu1 %v419_v45  ;;  %v301_v44 = vld [vmem:[#allocation3 + $0x140] sm:$0xff]  ;;  %v303_v45 = vld [vmem:[#allocation3 + $0x150] sm:$0xff] }
  0x71   : > { %469 = vmatprep.subr.mxu0 %v2253_v3  ;;  %659 = vmatprep.subr.mxu1 %v2253_v3 }
  0x72   : > { %470 = vmatpush2.msra.mxu0 %v386_v46  ;;  %660 = vmatpush2.msra.mxu1 %v418_v47  ;;  %v306_v46 = vld [vmem:[#allocation3 + $0x168] sm:$0xff]  ;;  %v308_v47 = vld [vmem:[#allocation3 + $0x178] sm:$0xff] }
  0x73   : > { %471 = vmatprep.subr.mxu0 %v2253_v3  ;;  %661 = vmatprep.subr.mxu1 %v2253_v3 }
  0x74   : > { %472 = vmatpush2.msra.mxu0 %v385_v48  ;;  %662 = vmatpush2.msra.mxu1 %v417_v49  ;;  %v305_v48 = vld [vmem:[#allocation3 + $0x160] sm:$0xff]  ;;  %v307_v49 = vld [vmem:[#allocation3 + $0x170] sm:$0xff] }
  0x75   : > { %473 = vmatprep.subr.mxu0 %v2253_v3  ;;  %663 = vmatprep.subr.mxu1 %v2253_v3 }
  0x76   : > { %474 = vmatpush2.msra.mxu0 %v384_v50  ;;  %664 = vmatpush2.msra.mxu1 %v416_v51  ;;  %v310_v50 = vld [vmem:[#allocation3 + $0x188] sm:$0xff]  ;;  %v312_v51 = vld [vmem:[#allocation3 + $0x198] sm:$0xff] }
  0x77   : > { %475 = vmatprep.subr.mxu0 %v2253_v3  ;;  %665 = vmatprep.subr.mxu1 %v2253_v3 }
  0x78   : > { %476 = vmatpush2.msra.mxu0 %v383_v52  ;;  %666 = vmatpush2.msra.mxu1 %v415_v53  ;;  %v309_v52 = vld [vmem:[#allocation3 + $0x180] sm:$0xff]  ;;  %v311_v53 = vld [vmem:[#allocation3 + $0x190] sm:$0xff] }
  0x79   : > { %477 = vmatprep.subr.mxu0 %v2253_v3  ;;  %667 = vmatprep.subr.mxu1 %v2253_v3 }
  0x7a   : > { %478 = vmatpush2.msra.mxu0 %v382_v54  ;;  %668 = vmatpush2.msra.mxu1 %v414_v55  ;;  %v314_v54 = vld [vmem:[#allocation3 + $0x1a8] sm:$0xff]  ;;  %v316_v55 = vld [vmem:[#allocation3 + $0x1b8] sm:$0xff] }
  0x7b   : > { %479 = vmatprep.subr.mxu0 %v2253_v3  ;;  %669 = vmatprep.subr.mxu1 %v2253_v3 }
  0x7c   : > { %480 = vmatpush2.msra.mxu0 %v381_v56  ;;  %670 = vmatpush2.msra.mxu1 %v413_v57  ;;  %v313_v56 = vld [vmem:[#allocation3 + $0x1a0] sm:$0xff]  ;;  %v315_v57 = vld [vmem:[#allocation3 + $0x1b0] sm:$0xff] }
  0x7d   : > { %481 = vmatprep.subr.mxu0 %v2253_v3  ;;  %671 = vmatprep.subr.mxu1 %v2253_v3 }
  0x7e   : > { %482 = vmatpush2.msra.mxu0 %v380_v58  ;;  %672 = vmatpush2.msra.mxu1 %v412_v59  ;;  %v318_v58 = vld [vmem:[#allocation3 + $0x1c8] sm:$0xff]  ;;  %v320_v59 = vld [vmem:[#allocation3 + $0x1d8] sm:$0xff] }
  0x7f   : > { %483 = vmatprep.subr.mxu0 %v2253_v3  ;;  %673 = vmatprep.subr.mxu1 %v2253_v3 }
  0x80   : > { %484 = vmatpush2.msra.mxu0 %v379_v60  ;;  %674 = vmatpush2.msra.mxu1 %v411_v61  ;;  %v317_v60 = vld [vmem:[#allocation3 + $0x1c0] sm:$0xff]  ;;  %v319_v61 = vld [vmem:[#allocation3 + $0x1d0] sm:$0xff] }
  0x81   : > { %485 = vmatprep.subr.mxu0 %v2253_v3  ;;  %675 = vmatprep.subr.mxu1 %v2253_v3 }
  0x82   : > { %486 = vmatpush2.msra.mxu0 %v378_v62  ;;  %676 = vmatpush2.msra.mxu1 %v410_v63  ;;  %v322_v62 = vld [vmem:[#allocation3 + $0x1e8] sm:$0xff]  ;;  %v324_v63 = vld [vmem:[#allocation3 + $0x1f8] sm:$0xff] }
  0x83   : > { %487 = vmatprep.subr.mxu0 %v2253_v3  ;;  %677 = vmatprep.subr.mxu1 %v2253_v3  ;;  %v269_v3 = vld [vmem:[#allocation3 + $0x40] sm:$0xff] }
  0x84   : > { %488 = vmatpush2.msra.mxu0 %v377_v0  ;;  %489 = vmatprep.mubr.f32.mxu0 %v262_v1  ;;  %v321_v0 = vld [vmem:[#allocation3 + $0x1e0] sm:$0xff]  ;;  %v323_v1 = vld [vmem:[#allocation3 + $0x1f0] sm:$0xff] }
  0x85   : > { %678 = vmatpush2.msra.mxu1 %v409_v2  ;;  %679 = vmatprep.mubr.f32.mxu1 %v264_v4  ;;  %v326_v2 = vld [vmem:[#allocation3 + $0x208] sm:$0xff]  ;;  %v328_v4 = vld [vmem:[#allocation3 + $0x218] sm:$0xff] }
  0x86   : > { %490 = vmatmul.mubr.f32.vlgmr.msra.gmra.mxu0 %v261_v5  ;;  %680 = vmatmul.mubr.f32.vlgmr.msra.gmra.mxu1 %v263_v6  ;;  %v325_v5 = vld [vmem:[#allocation3 + $0x200] sm:$0xff]  ;;  %v327_v6 = vld [vmem:[#allocation3 + $0x210] sm:$0xff] }
  0x87   : > { %494 = vmatprep.mubr.f32.mxu0 %v266_v7  ;;  %684 = vmatprep.mubr.f32.mxu1 %v268_v8  ;;  %v330_v7 = vld [vmem:[#allocation3 + $0x228] sm:$0xff]  ;;  %v332_v8 = vld [vmem:[#allocation3 + $0x238] sm:$0xff] }
  0x8a   : > { %495 = vmatmul.mubr.f32.gmra.mxu0 %v265_v9  ;;  %685 = vmatmul.mubr.f32.gmra.mxu1 %v267_v10  ;;  %v329_v9 = vld [vmem:[#allocation3 + $0x220] sm:$0xff]  ;;  %v331_v10 = vld [vmem:[#allocation3 + $0x230] sm:$0xff] }
  0x8b   : > { %499 = vmatprep.mubr.f32.mxu0 %v270_v11  ;;  %689 = vmatprep.mubr.f32.mxu1 %v272_v12  ;;  %v334_v11 = vld [vmem:[#allocation3 + $0x248] sm:$0xff]  ;;  %v336_v12 = vld [vmem:[#allocation3 + $0x258] sm:$0xff] }
  0x8e   : > { %500 = vmatmul.mubr.f32.gmra.mxu0 %v269_v3  ;;  %690 = vmatmul.mubr.f32.gmra.mxu1 %v271_v13  ;;  %v333_v3 = vld [vmem:[#allocation3 + $0x240] sm:$0xff]  ;;  %v335_v13 = vld [vmem:[#allocation3 + $0x250] sm:$0xff] }
  0x8f   : > { %504 = vmatprep.mubr.f32.mxu0 %v274_v14  ;;  %694 = vmatprep.mubr.f32.mxu1 %v276_v15  ;;  %v338_v14 = vld [vmem:[#allocation3 + $0x268] sm:$0xff]  ;;  %v340_v15 = vld [vmem:[#allocation3 + $0x278] sm:$0xff] }
  0x92   : > { %505 = vmatmul.mubr.f32.gmra.mxu0 %v273_v16  ;;  %695 = vmatmul.mubr.f32.gmra.mxu1 %v275_v17  ;;  %v337_v16 = vld [vmem:[#allocation3 + $0x260] sm:$0xff]  ;;  %v339_v17 = vld [vmem:[#allocation3 + $0x270] sm:$0xff] }
  0x93   : > { %509 = vmatprep.mubr.f32.mxu0 %v278_v18  ;;  %699 = vmatprep.mubr.f32.mxu1 %v280_v19  ;;  %v342_v18 = vld [vmem:[#allocation3 + $0x288] sm:$0xff]  ;;  %v344_v19 = vld [vmem:[#allocation3 + $0x298] sm:$0xff] }
  0x96   : > { %510 = vmatmul.mubr.f32.gmra.mxu0 %v277_v20  ;;  %700 = vmatmul.mubr.f32.gmra.mxu1 %v279_v21  ;;  %v341_v20 = vld [vmem:[#allocation3 + $0x280] sm:$0xff]  ;;  %v343_v21 = vld [vmem:[#allocation3 + $0x290] sm:$0xff] }
  0x97   : > { %514 = vmatprep.mubr.f32.mxu0 %v282_v22  ;;  %704 = vmatprep.mubr.f32.mxu1 %v284_v23  ;;  %v346_v22 = vld [vmem:[#allocation3 + $0x2a8] sm:$0xff]  ;;  %v348_v23 = vld [vmem:[#allocation3 + $0x2b8] sm:$0xff] }
  0x9a   : > { %515 = vmatmul.mubr.f32.gmra.mxu0 %v281_v24  ;;  %705 = vmatmul.mubr.f32.gmra.mxu1 %v283_v25  ;;  %v345_v24 = vld [vmem:[#allocation3 + $0x2a0] sm:$0xff]  ;;  %v347_v25 = vld [vmem:[#allocation3 + $0x2b0] sm:$0xff] }
  0x9b   : > { %519 = vmatprep.mubr.f32.mxu0 %v286_v26  ;;  %709 = vmatprep.mubr.f32.mxu1 %v288_v27  ;;  %v350_v26 = vld [vmem:[#allocation3 + $0x2c8] sm:$0xff]  ;;  %v352_v27 = vld [vmem:[#allocation3 + $0x2d8] sm:$0xff] }
  0x9e   : > { %520 = vmatmul.mubr.f32.gmra.mxu0 %v285_v28  ;;  %710 = vmatmul.mubr.f32.gmra.mxu1 %v287_v29  ;;  %v349_v28 = vld [vmem:[#allocation3 + $0x2c0] sm:$0xff]  ;;  %v351_v29 = vld [vmem:[#allocation3 + $0x2d0] sm:$0xff] }
  0x9f   : > { %524 = vmatprep.mubr.f32.mxu0 %v290_v30  ;;  %714 = vmatprep.mubr.f32.mxu1 %v292_v31  ;;  %v354_v30 = vld [vmem:[#allocation3 + $0x2e8] sm:$0xff]  ;;  %v356_v31 = vld [vmem:[#allocation3 + $0x2f8] sm:$0xff] }
  0xa2   : > { %525 = vmatmul.mubr.f32.gmra.mxu0 %v289_v32  ;;  %715 = vmatmul.mubr.f32.gmra.mxu1 %v291_v33  ;;  %v353_v32 = vld [vmem:[#allocation3 + $0x2e0] sm:$0xff]  ;;  %v355_v33 = vld [vmem:[#allocation3 + $0x2f0] sm:$0xff] }
  0xa3   : > { %529 = vmatprep.mubr.f32.mxu0 %v294_v34  ;;  %719 = vmatprep.mubr.f32.mxu1 %v296_v35  ;;  %v358_v34 = vld [vmem:[#allocation3 + $0x308] sm:$0xff]  ;;  %v360_v35 = vld [vmem:[#allocation3 + $0x318] sm:$0xff] }
  0xa6   : > { %530 = vmatmul.mubr.f32.gmra.mxu0 %v293_v36  ;;  %720 = vmatmul.mubr.f32.gmra.mxu1 %v295_v37  ;;  %v357_v36 = vld [vmem:[#allocation3 + $0x300] sm:$0xff]  ;;  %v359_v37 = vld [vmem:[#allocation3 + $0x310] sm:$0xff] }
  0xa7   : > { %534 = vmatprep.mubr.f32.mxu0 %v298_v38  ;;  %724 = vmatprep.mubr.f32.mxu1 %v300_v39  ;;  %v236_v39 = vld [vmem:[#allocation2 + $0xb0] sm:$0xff] }
  0xaa   : > { %535 = vmatmul.mubr.f32.gmra.mxu0 %v297_v40  ;;  %725 = vmatmul.mubr.f32.gmra.mxu1 %v299_v41 }
  0xab   : > { %539 = vmatprep.mubr.f32.mxu0 %v302_v42  ;;  %729 = vmatprep.mubr.f32.mxu1 %v304_v43 }
  0xae   : > { %540 = vmatmul.mubr.f32.gmra.mxu0 %v301_v44  ;;  %730 = vmatmul.mubr.f32.gmra.mxu1 %v303_v45 }
  0xaf   : > { %544 = vmatprep.mubr.f32.mxu0 %v306_v46  ;;  %734 = vmatprep.mubr.f32.mxu1 %v308_v47  ;;  %v237_v46 = vld [vmem:[#allocation2] sm:$0xff] }
  0xb2   : > { %545 = vmatmul.mubr.f32.gmra.mxu0 %v305_v48  ;;  %735 = vmatmul.mubr.f32.gmra.mxu1 %v307_v49 }
  0xb3   : > { %549 = vmatprep.mubr.f32.mxu0 %v310_v50  ;;  %739 = vmatprep.mubr.f32.mxu1 %v312_v51 }
  0xb6   : > { %550 = vmatmul.mubr.f32.gmra.mxu0 %v309_v52  ;;  %740 = vmatmul.mubr.f32.gmra.mxu1 %v311_v53  ;;  %v238_v53 = vld [vmem:[#allocation2 + $0x10] sm:$0xff] }
  0xb7   : > { %554 = vmatprep.mubr.f32.mxu0 %v314_v54  ;;  %744 = vmatprep.mubr.f32.mxu1 %v316_v55 }
  0xba   : > { %555 = vmatmul.mubr.f32.gmra.mxu0 %v313_v56  ;;  %745 = vmatmul.mubr.f32.gmra.mxu1 %v315_v57 }
  0xbb   : > { %559 = vmatprep.mubr.f32.mxu0 %v318_v58  ;;  %749 = vmatprep.mubr.f32.mxu1 %v320_v59 }
  0xbe   : > { %560 = vmatmul.mubr.f32.gmra.mxu0 %v317_v60  ;;  %750 = vmatmul.mubr.f32.gmra.mxu1 %v319_v61  ;;  %v239_v60 = vld [vmem:[#allocation2 + $0x48] sm:$0xff] }
  0xbf   : > { %564 = vmatprep.mubr.f32.mxu0 %v322_v62  ;;  %754 = vmatprep.mubr.f32.mxu1 %v324_v63 }
  0xc2   : > { %565 = vmatmul.mubr.f32.gmra.mxu0 %v321_v0  ;;  %755 = vmatmul.mubr.f32.gmra.mxu1 %v323_v1 }
  0xc3   : > { %569 = vmatprep.mubr.f32.mxu0 %v326_v2  ;;  %759 = vmatprep.mubr.f32.mxu1 %v328_v4  ;;  %v240_v4 = vld [vmem:[#allocation2 + $0x60] sm:$0xff] }
  0xc6   : > { %570 = vmatmul.mubr.f32.gmra.mxu0 %v325_v5  ;;  %760 = vmatmul.mubr.f32.gmra.mxu1 %v327_v6 }
  0xc7   : > { %574 = vmatprep.mubr.f32.mxu0 %v330_v7  ;;  %764 = vmatprep.mubr.f32.mxu1 %v332_v8 }
  0xca   : > { %575 = vmatmul.mubr.f32.gmra.mxu0 %v329_v9  ;;  %765 = vmatmul.mubr.f32.gmra.mxu1 %v331_v10 }
  0xcb   : > { %579 = vmatprep.mubr.f32.mxu0 %v334_v11  ;;  %769 = vmatprep.mubr.f32.mxu1 %v336_v12  ;;  %v241_v11 = vld [vmem:[#allocation2 + $0x28] sm:$0xff] }
  0xce   : > { %580 = vmatmul.mubr.f32.gmra.mxu0 %v333_v3  ;;  %770 = vmatmul.mubr.f32.gmra.mxu1 %v335_v13 }
  0xcf   : > { %584 = vmatprep.mubr.f32.mxu0 %v338_v14  ;;  %774 = vmatprep.mubr.f32.mxu1 %v340_v15 }
  0xd2   : > { %585 = vmatmul.mubr.f32.gmra.mxu0 %v337_v16  ;;  %775 = vmatmul.mubr.f32.gmra.mxu1 %v339_v17  ;;  %v242_v17 = vld [vmem:[#allocation2 + $0x40] sm:$0xff] }
  0xd3   : > { %589 = vmatprep.mubr.f32.mxu0 %v342_v18  ;;  %779 = vmatprep.mubr.f32.mxu1 %v344_v19 }
  0xd6   : > { %590 = vmatmul.mubr.f32.gmra.mxu0 %v341_v20  ;;  %780 = vmatmul.mubr.f32.gmra.mxu1 %v343_v21 }
  0xd7   : > { %594 = vmatprep.mubr.f32.mxu0 %v346_v22  ;;  %784 = vmatprep.mubr.f32.mxu1 %v348_v23 }
  0xda   : > { %595 = vmatmul.mubr.f32.gmra.mxu0 %v345_v24  ;;  %785 = vmatmul.mubr.f32.gmra.mxu1 %v347_v25  ;;  %v243_v24 = vld [vmem:[#allocation2 + $0x78] sm:$0xff] }
  0xdb   : > { %599 = vmatprep.mubr.f32.mxu0 %v350_v26  ;;  %789 = vmatprep.mubr.f32.mxu1 %v352_v27 }
  0xde   : > { %600 = vmatmul.mubr.f32.gmra.mxu0 %v349_v28  ;;  %790 = vmatmul.mubr.f32.gmra.mxu1 %v351_v29 }
  0xdf   : > { %604 = vmatprep.mubr.f32.mxu0 %v354_v30  ;;  %794 = vmatprep.mubr.f32.mxu1 %v356_v31  ;;  %v244_v31 = vld [vmem:[#allocation2 + $0x80] sm:$0xff] }
  0xe2   : > { %605 = vmatmul.mubr.f32.gmra.mxu0 %v353_v32  ;;  %795 = vmatmul.mubr.f32.gmra.mxu1 %v355_v33 }
  0xe3   : > { %609 = vmatprep.mubr.f32.mxu0 %v358_v34  ;;  %799 = vmatprep.mubr.f32.mxu1 %v360_v35 }
  0xe6   : > { %610 = vmatmul.mubr.f32.gmra.mxu0 %v357_v36  ;;  %800 = vmatmul.mubr.f32.gmra.mxu1 %v359_v37 }
 0x146   : > { %v491_v38 = vpop.f32.mrf.mxu0  ;;  %v681_v40 = vpop.f32.mrf.mxu1 }
 0x147   : > { %v682_v41 = vadd.f32 %v681_v40, %v491_v38  ;;  %v245_v38 = vld [vmem:[#allocation2 + $0x88] sm:$0xff] }
 0x148   : > { %v493_v42 = vpop.f32.mrf.mxu0  ;;  %v683_v43 = vpop.f32.mrf.mxu1 }
 0x149   : > { %v805_v44 = vadd.f32 %v682_v41, %v236_v39 }
 0x14a   : > { %v496_v45 = vpop.f32.mrf.mxu0  ;;  %v686_v47 = vpop.f32.mrf.mxu1 }
 0x14b   : > { %830 = vst [vmem:[#allocation2 + $0xb0] sm:$0xff] %v805_v44  ;;  %v687_v48 = vadd.f32 %v686_v47, %v496_v45  ;;  %v246_v45 = vld [vmem:[#allocation2 + $0xb8] sm:$0xff] }
 0x14c   : > { %v498_v49 = vpop.f32.mrf.mxu0  ;;  %v688_v50 = vpop.f32.mrf.mxu1 }
 0x14d   : > { %v806_v51 = vadd.f32 %v687_v48, %v237_v46 }
 0x14e   : > { %v501_v52 = vpop.f32.mrf.mxu0  ;;  %v691_v54 = vpop.f32.mrf.mxu1 }
 0x14f   : > { %831 = vst [vmem:[#allocation2] sm:$0xff] %v806_v51  ;;  %v692_v55 = vadd.f32 %v691_v54, %v501_v52  ;;  %v247_v52 = vld [vmem:[#allocation2 + $0x70] sm:$0xff] }
 0x150   : > { %v503_v56 = vpop.f32.mrf.mxu0  ;;  %v693_v57 = vpop.f32.mrf.mxu1 }
 0x151   : > { %v807_v58 = vadd.f32 %v692_v55, %v238_v53 }
 0x152   : > { %v506_v59 = vpop.f32.mrf.mxu0  ;;  %v696_v61 = vpop.f32.mrf.mxu1 }
 0x153   : > { %832 = vst [vmem:[#allocation2 + $0x10] sm:$0xff] %v807_v58  ;;  %v697_v62 = vadd.f32 %v696_v61, %v506_v59  ;;  %v248_v59 = vld [vmem:[#allocation2 + $0x18] sm:$0xff] }
 0x154   : > { %v508_v63 = vpop.f32.mrf.mxu0  ;;  %v698_v0 = vpop.f32.mrf.mxu1 }
 0x155   : > { %v808_v1 = vadd.f32 %v697_v62, %v239_v60 }
 0x156   : > { %v511_v2 = vpop.f32.mrf.mxu0  ;;  %v701_v5 = vpop.f32.mrf.mxu1 }
 0x157   : > { %833 = vst [vmem:[#allocation2 + $0x48] sm:$0xff] %v808_v1  ;;  %v702_v6 = vadd.f32 %v701_v5, %v511_v2  ;;  %v249_v2 = vld [vmem:[#allocation2 + $0x68] sm:$0xff] }
 0x158   : > { %v513_v7 = vpop.f32.mrf.mxu0  ;;  %v703_v8 = vpop.f32.mrf.mxu1 }
 0x159   : > { %v809_v9 = vadd.f32 %v702_v6, %v240_v4 }
 0x15a   : > { %v516_v10 = vpop.f32.mrf.mxu0  ;;  %v706_v12 = vpop.f32.mrf.mxu1 }
 0x15b   : > { %834 = vst [vmem:[#allocation2 + $0x60] sm:$0xff] %v809_v9  ;;  %v707_v3 = vadd.f32 %v706_v12, %v516_v10  ;;  %v250_v10 = vld [vmem:[#allocation2 + $0x98] sm:$0xff] }
 0x15c   : > { %v518_v13 = vpop.f32.mrf.mxu0  ;;  %v708_v14 = vpop.f32.mrf.mxu1 }
 0x15d   : > { %v810_v15 = vadd.f32 %v707_v3, %v241_v11 }
 0x15e   : > { %v521_v16 = vpop.f32.mrf.mxu0  ;;  %v711_v18 = vpop.f32.mrf.mxu1 }
 0x15f   : > { %835 = vst [vmem:[#allocation2 + $0x28] sm:$0xff] %v810_v15  ;;  %v712_v19 = vadd.f32 %v711_v18, %v521_v16  ;;  %v251_v16 = vld [vmem:[#allocation2 + $0xa0] sm:$0xff] }
 0x160   : > { %v523_v20 = vpop.f32.mrf.mxu0  ;;  %v713_v21 = vpop.f32.mrf.mxu1 }
 0x161   : > { %v811_v22 = vadd.f32 %v712_v19, %v242_v17 }
 0x162   : > { %v526_v23 = vpop.f32.mrf.mxu0  ;;  %v716_v25 = vpop.f32.mrf.mxu1 }
 0x163   : > { %836 = vst [vmem:[#allocation2 + $0x40] sm:$0xff] %v811_v22  ;;  %v717_v26 = vadd.f32 %v716_v25, %v526_v23  ;;  %v252_v23 = vld [vmem:[#allocation2 + $0x20] sm:$0xff] }
 0x164   : > { %v528_v27 = vpop.f32.mrf.mxu0  ;;  %v718_v28 = vpop.f32.mrf.mxu1 }
 0x165   : > { %v812_v29 = vadd.f32 %v717_v26, %v243_v24 }
 0x166   : > { %v531_v30 = vpop.f32.mrf.mxu0  ;;  %v721_v32 = vpop.f32.mrf.mxu1 }
 0x167   : > { %837 = vst [vmem:[#allocation2 + $0x78] sm:$0xff] %v812_v29  ;;  %v722_v33 = vadd.f32 %v721_v32, %v531_v30  ;;  %v253_v30 = vld [vmem:[#allocation2 + $0x30] sm:$0xff] }
 0x168   : > { %v533_v34 = vpop.f32.mrf.mxu0  ;;  %v723_v35 = vpop.f32.mrf.mxu1 }
 0x169   : > { %v813_v36 = vadd.f32 %v722_v33, %v244_v31 }
 0x16a   : > { %v536_v37 = vpop.f32.mrf.mxu0  ;;  %v726_v39 = vpop.f32.mrf.mxu1 }
 0x16b   : > { %838 = vst [vmem:[#allocation2 + $0x80] sm:$0xff] %v813_v36  ;;  %v727_v40 = vadd.f32 %v726_v39, %v536_v37  ;;  %v254_v37 = vld [vmem:[#allocation2 + $0x90] sm:$0xff] }
 0x16c   : > { %v538_v41 = vpop.f32.mrf.mxu0  ;;  %v728_v42 = vpop.f32.mrf.mxu1 }
 0x16d   : > { %v814_v43 = vadd.f32 %v727_v40, %v245_v38 }
 0x16e   : > { %v541_v44 = vpop.f32.mrf.mxu0  ;;  %v731_v46 = vpop.f32.mrf.mxu1 }
 0x16f   : > { %839 = vst [vmem:[#allocation2 + $0x88] sm:$0xff] %v814_v43  ;;  %v732_v47 = vadd.f32 %v731_v46, %v541_v44  ;;  %v255_v44 = vld [vmem:[#allocation2 + $0x38] sm:$0xff] }
 0x170   : > { %v543_v48 = vpop.f32.mrf.mxu0  ;;  %v733_v49 = vpop.f32.mrf.mxu1 }
 0x171   : > { %v815_v50 = vadd.f32 %v732_v47, %v246_v45 }
 0x172   : > { %v546_v51 = vpop.f32.mrf.mxu0  ;;  %v736_v53 = vpop.f32.mrf.mxu1 }
 0x173   : > { %840 = vst [vmem:[#allocation2 + $0xb8] sm:$0xff] %v815_v50  ;;  %v737_v54 = vadd.f32 %v736_v53, %v546_v51  ;;  %v256_v51 = vld [vmem:[#allocation2 + $0x58] sm:$0xff] }
 0x174   : > { %v548_v55 = vpop.f32.mrf.mxu0  ;;  %v738_v56 = vpop.f32.mrf.mxu1 }
 0x175   : > { %v816_v57 = vadd.f32 %v737_v54, %v247_v52 }
 0x176   : > { %v551_v58 = vpop.f32.mrf.mxu0  ;;  %v741_v60 = vpop.f32.mrf.mxu1 }
 0x177   : > { %841 = vst [vmem:[#allocation2 + $0x70] sm:$0xff] %v816_v57  ;;  %v742_v61 = vadd.f32 %v741_v60, %v551_v58  ;;  %v257_v58 = vld [vmem:[#allocation2 + $0x50] sm:$0xff] }
 0x178   : > { %v553_v62 = vpop.f32.mrf.mxu0  ;;  %v743_v63 = vpop.f32.mrf.mxu1 }
 0x179   : > { %v817_v0 = vadd.f32 %v742_v61, %v248_v59 }
 0x17a   : > { %v556_v1 = vpop.f32.mrf.mxu0  ;;  %v746_v4 = vpop.f32.mrf.mxu1 }
 0x17b   : > { %842 = vst [vmem:[#allocation2 + $0x18] sm:$0xff] %v817_v0  ;;  %v747_v5 = vadd.f32 %v746_v4, %v556_v1  ;;  %v258_v1 = vld [vmem:[#allocation2 + $0x8] sm:$0xff] }
 0x17c   : > { %v558_v6 = vpop.f32.mrf.mxu0  ;;  %v748_v7 = vpop.f32.mrf.mxu1 }
 0x17d   : > { %v818_v8 = vadd.f32 %v747_v5, %v249_v2 }
 0x17e   : > { %v561_v9 = vpop.f32.mrf.mxu0  ;;  %v751_v11 = vpop.f32.mrf.mxu1 }
 0x17f   : > { %843 = vst [vmem:[#allocation2 + $0x68] sm:$0xff] %v818_v8  ;;  %v752_v12 = vadd.f32 %v751_v11, %v561_v9  ;;  %v259_v9 = vld [vmem:[#allocation2 + $0xa8] sm:$0xff] }
 0x180   : > { %v563_v3 = vpop.f32.mrf.mxu0  ;;  %v753_v13 = vpop.f32.mrf.mxu1 }
 0x181   : > { %v819_v14 = vadd.f32 %v752_v12, %v250_v10 }
 0x182   : > { %v566_v15 = vpop.f32.mrf.mxu0  ;;  %v756_v17 = vpop.f32.mrf.mxu1 }
 0x183   : > { %844 = vst [vmem:[#allocation2 + $0x98] sm:$0xff] %v819_v14  ;;  %v757_v18 = vadd.f32 %v756_v17, %v566_v15  ;;  %v260_v15 = vld [vmem:[#allocation2 + $0xc0] sm:$0xff] }
 0x184   : > { %v568_v19 = vpop.f32.mrf.mxu0  ;;  %v758_v20 = vpop.f32.mrf.mxu1 }
 0x185   : > { %v820_v21 = vadd.f32 %v757_v18, %v251_v16 }
 0x186   : > { %v571_v22 = vpop.f32.mrf.mxu0  ;;  %v761_v24 = vpop.f32.mrf.mxu1 }
 0x187   : > { %845 = vst [vmem:[#allocation2 + $0xa0] sm:$0xff] %v820_v21  ;;  %v762_v25 = vadd.f32 %v761_v24, %v571_v22 }
 0x188   : > { %v573_v26 = vpop.f32.mrf.mxu0  ;;  %v763_v27 = vpop.f32.mrf.mxu1 }
 0x189   : > { %v821_v28 = vadd.f32 %v762_v25, %v252_v23 }
 0x18a   : > { %v576_v29 = vpop.f32.mrf.mxu0  ;;  %v766_v31 = vpop.f32.mrf.mxu1 }
 0x18b   : > { %846 = vst [vmem:[#allocation2 + $0x20] sm:$0xff] %v821_v28  ;;  %v767_v32 = vadd.f32 %v766_v31, %v576_v29 }
 0x18c   : > { %v578_v33 = vpop.f32.mrf.mxu0  ;;  %v768_v34 = vpop.f32.mrf.mxu1 }
 0x18d   : > { %v822_v35 = vadd.f32 %v767_v32, %v253_v30 }
 0x18e   : > { %v581_v36 = vpop.f32.mrf.mxu0  ;;  %v771_v38 = vpop.f32.mrf.mxu1 }
 0x18f   : > { %847 = vst [vmem:[#allocation2 + $0x30] sm:$0xff] %v822_v35  ;;  %v772_v39 = vadd.f32 %v771_v38, %v581_v36 }
 0x190   : > { %v583_v40 = vpop.f32.mrf.mxu0  ;;  %v773_v41 = vpop.f32.mrf.mxu1 }
 0x191   : > { %v823_v42 = vadd.f32 %v772_v39, %v254_v37 }
 0x192   : > { %v586_v43 = vpop.f32.mrf.mxu0  ;;  %v776_v45 = vpop.f32.mrf.mxu1 }
 0x193   : > { %848 = vst [vmem:[#allocation2 + $0x90] sm:$0xff] %v823_v42  ;;  %v777_v46 = vadd.f32 %v776_v45, %v586_v43 }
 0x194   : > { %v588_v47 = vpop.f32.mrf.mxu0  ;;  %v778_v48 = vpop.f32.mrf.mxu1 }
 0x195   : > { %v824_v49 = vadd.f32 %v777_v46, %v255_v44 }
 0x196   : > { %v591_v50 = vpop.f32.mrf.mxu0  ;;  %v781_v52 = vpop.f32.mrf.mxu1 }
 0x197   : > { %849 = vst [vmem:[#allocation2 + $0x38] sm:$0xff] %v824_v49  ;;  %v782_v53 = vadd.f32 %v781_v52, %v591_v50 }
 0x198   : > { %v593_v54 = vpop.f32.mrf.mxu0  ;;  %v783_v55 = vpop.f32.mrf.mxu1 }
 0x199   : > { %v825_v56 = vadd.f32 %v782_v53, %v256_v51 }
 0x19a   : > { %v596_v57 = vpop.f32.mrf.mxu0  ;;  %v786_v59 = vpop.f32.mrf.mxu1 }
 0x19b   : > { %850 = vst [vmem:[#allocation2 + $0x58] sm:$0xff] %v825_v56  ;;  %v787_v60 = vadd.f32 %v786_v59, %v596_v57 }
 0x19c   : > { %v598_v61 = vpop.f32.mrf.mxu0  ;;  %v788_v62 = vpop.f32.mrf.mxu1 }
 0x19d   : > { %v826_v63 = vadd.f32 %v787_v60, %v257_v58 }
 0x19e   : > { %v601_v0 = vpop.f32.mrf.mxu0  ;;  %v791_v2 = vpop.f32.mrf.mxu1 }
 0x19f   : > { %851 = vst [vmem:[#allocation2 + $0x50] sm:$0xff] %v826_v63  ;;  %v792_v4 = vadd.f32 %v791_v2, %v601_v0 }
 0x1a0   : > { %v603_v5 = vpop.f32.mrf.mxu0  ;;  %v793_v6 = vpop.f32.mrf.mxu1 }
 0x1a1   : > { %v827_v7 = vadd.f32 %v792_v4, %v258_v1 }
 0x1a2   : > { %v606_v8 = vpop.f32.mrf.mxu0  ;;  %v796_v10 = vpop.f32.mrf.mxu1 }
 0x1a3   : > { %852 = vst [vmem:[#allocation2 + $0x8] sm:$0xff] %v827_v7  ;;  %v797_v11 = vadd.f32 %v796_v10, %v606_v8 }
 0x1a4   : > { %v608_v12 = vpop.f32.mrf.mxu0  ;;  %v798_v3 = vpop.f32.mrf.mxu1 }
 0x1a5   : > { %v828_v13 = vadd.f32 %v797_v11, %v259_v9 }
 0x1a6   : > { %v611_v14 = vpop.f32.mrf.mxu0  ;;  %v801_v16 = vpop.f32.mrf.mxu1 }
 0x1a7   : > { %853 = vst [vmem:[#allocation2 + $0xa8] sm:$0xff] %v828_v13  ;;  %v802_v17 = vadd.f32 %v801_v16, %v611_v14 }
 0x1a8   : > { %v613_v18 = vpop.f32.mrf.mxu0  ;;  %v803_v19 = vpop.f32.mrf.mxu1 }
 0x1a9   : > { %v829_v20 = vadd.f32 %v802_v17, %v260_v15 }
 0x1ab   : > { %854 = vst [vmem:[#allocation2 + $0xc0] sm:$0xff] %v829_v20 }
 0x1ac PF: > { %p1899_p4 = scmp.ne.s32.totalorder %s2236_s9, 1 }
 0x1ae   : > { %858 = sbr.rel (%p1899_p4) target bundleno = 798 (0x31e), region = 48 }
 0x1b3   : > { %v915_v21 = vld [vmem:[#allocation6 + $0xf8] sm:$0xff]  ;;  %v914_v25 = vld [vmem:[#allocation6 + $0xf0] sm:$0xff]  ;;  %v913_v29 = vld [vmem:[#allocation6 + $0xe8] sm:$0xff] }
 0x1b4   : > { %v947_v22 = vld [vmem:[#allocation6 + $0x1f8] sm:$0xff]  ;;  %1905 = vmatprep.subr.mxu0 %v915_v21  ;;  %v946_v26 = vld [vmem:[#allocation6 + $0x1f0] sm:$0xff]  ;;  %v945_v30 = vld [vmem:[#allocation6 + $0x1e8] sm:$0xff] }
 0x1b5   : > { %v899_v23 = vld [vmem:[#allocation6 + $0x78] sm:$0xff]  ;;  %1987 = vmatprep.subr.mxu1 %v947_v22  ;;  %v898_v27 = vld [vmem:[#allocation6 + $0x70] sm:$0xff]  ;;  %v897_v31 = vld [vmem:[#allocation6 + $0x68] sm:$0xff] }
 0x1b6   : > { %v931_v24 = vld [vmem:[#allocation6 + $0x178] sm:$0xff]  ;;  %1906 = vmatpush3.xpose.msra.mxu0 %v899_v23  ;;  %v930_v28 = vld [vmem:[#allocation6 + $0x170] sm:$0xff]  ;;  %v929_v32 = vld [vmem:[#allocation6 + $0x168] sm:$0xff] }
 0x1b7   : > { %1988 = vmatpush3.xpose.msra.mxu1 %v931_v24  ;;  %1907 = vmatprep.subr.mxu0 %v914_v25  ;;  %v912_v33 = vld [vmem:[#allocation6 + $0xe0] sm:$0xff]  ;;  %v911_v37 = vld [vmem:[#allocation6 + $0xd8] sm:$0xff]  ;;  %v910_v41 = vld [vmem:[#allocation6 + $0xd0] sm:$0xff] }
 0x1b8   : > { %1989 = vmatprep.subr.mxu1 %v946_v26  ;;  %v944_v34 = vld [vmem:[#allocation6 + $0x1e0] sm:$0xff]  ;;  %v943_v38 = vld [vmem:[#allocation6 + $0x1d8] sm:$0xff]  ;;  %v942_v42 = vld [vmem:[#allocation6 + $0x1d0] sm:$0xff] }
 0x1b9   : > { %v896_v35 = vld [vmem:[#allocation6 + $0x60] sm:$0xff]  ;;  %v895_v39 = vld [vmem:[#allocation6 + $0x58] sm:$0xff]  ;;  %v894_v43 = vld [vmem:[#allocation6 + $0x50] sm:$0xff] }
 0x1ba   : > { %1908 = vmatpush3.xpose.msra.mxu0 %v898_v27  ;;  %v928_v36 = vld [vmem:[#allocation6 + $0x160] sm:$0xff]  ;;  %v927_v40 = vld [vmem:[#allocation6 + $0x158] sm:$0xff]  ;;  %v926_v44 = vld [vmem:[#allocation6 + $0x150] sm:$0xff] }
 0x1bb   : > { %1990 = vmatpush3.xpose.msra.mxu1 %v930_v28  ;;  %1909 = vmatprep.subr.mxu0 %v913_v29  ;;  %v909_v45 = vld [vmem:[#allocation6 + $0xc8] sm:$0xff]  ;;  %v908_v50 = vld [vmem:[#allocation6 + $0xc0] sm:$0xff]  ;;  %v907_v54 = vld [vmem:[#allocation6 + $0xb8] sm:$0xff] }
 0x1bc   : > { %1991 = vmatprep.subr.mxu1 %v945_v30  ;;  %v941_v46 = vld [vmem:[#allocation6 + $0x1c8] sm:$0xff]  ;;  %v940_v51 = vld [vmem:[#allocation6 + $0x1c0] sm:$0xff]  ;;  %v939_v55 = vld [vmem:[#allocation6 + $0x1b8] sm:$0xff] }
 0x1bd   : > { %v2407_v47 = vld [vmem:[#allocation2 + $0xb0] sm:$0xff]  ;;  %v892_v52 = vld [vmem:[#allocation6 + $0x40] sm:$0xff]  ;;  %v891_v56 = vld [vmem:[#allocation6 + $0x38] sm:$0xff] }
 0x1be   : > { %1910 = vmatpush3.xpose.msra.mxu0 %v897_v31  ;;  %v893_v48 = vld [vmem:[#allocation6 + $0x48] sm:$0xff]  ;;  %1937 = vmatprep.mubr.f32.mxu0 %v2407_v47  ;;  %v924_v53 = vld [vmem:[#allocation6 + $0x140] sm:$0xff]  ;;  %v923_v57 = vld [vmem:[#allocation6 + $0x138] sm:$0xff] }
 0x1bf   : > { %1992 = vmatpush3.xpose.msra.mxu1 %v929_v32  ;;  %1911 = vmatprep.subr.mxu0 %v912_v33  ;;  %v925_v49 = vld [vmem:[#allocation6 + $0x148] sm:$0xff]  ;;  %v906_v58 = vld [vmem:[#allocation6 + $0xb0] sm:$0xff]  ;;  %v904_v2 = vld [vmem:[#allocation6 + $0xa0] sm:$0xff] }
 0x1c0   : > { %1993 = vmatprep.subr.mxu1 %v944_v34  ;;  %2019 = vmatprep.mubr.f32.mxu1 %v2407_v47  ;;  %v938_v59 = vld [vmem:[#allocation6 + $0x1b0] sm:$0xff]  ;;  %v905_v62 = vld [vmem:[#allocation6 + $0xa8] sm:$0xff]  ;;  %v936_v4 = vld [vmem:[#allocation6 + $0x1a0] sm:$0xff] }
 0x1c1   : > { %v890_v60 = vld [vmem:[#allocation6 + $0x30] sm:$0xff]  ;;  %v937_v63 = vld [vmem:[#allocation6 + $0x1a8] sm:$0xff]  ;;  %v888_v5 = vld [vmem:[#allocation6 + $0x20] sm:$0xff] }
 0x1c2   : > { %1912 = vmatpush3.xpose.msra.mxu0 %v896_v35  ;;  %v922_v61 = vld [vmem:[#allocation6 + $0x130] sm:$0xff]  ;;  %v889_v0 = vld [vmem:[#allocation6 + $0x28] sm:$0xff]  ;;  %v920_v6 = vld [vmem:[#allocation6 + $0x120] sm:$0xff] }
 0x1c3   : > { %1994 = vmatpush3.xpose.msra.mxu1 %v928_v36  ;;  %1913 = vmatprep.subr.mxu0 %v911_v37  ;;  %v921_v1 = vld [vmem:[#allocation6 + $0x128] sm:$0xff]  ;;  %v903_v7 = vld [vmem:[#allocation6 + $0x98] sm:$0xff]  ;;  %v902_v11 = vld [vmem:[#allocation6 + $0x90] sm:$0xff] }
 0x1c4   : > { %1995 = vmatprep.subr.mxu1 %v943_v38  ;;  %v935_v8 = vld [vmem:[#allocation6 + $0x198] sm:$0xff]  ;;  %v934_v12 = vld [vmem:[#allocation6 + $0x190] sm:$0xff]  ;;  %v901_v14 = vld [vmem:[#allocation6 + $0x88] sm:$0xff] }
 0x1c5   : > { %v887_v9 = vld [vmem:[#allocation6 + $0x18] sm:$0xff]  ;;  %v886_v3 = vld [vmem:[#allocation6 + $0x10] sm:$0xff]  ;;  %v933_v15 = vld [vmem:[#allocation6 + $0x188] sm:$0xff] }
 0x1c6   : > { %1914 = vmatpush3.xpose.msra.mxu0 %v895_v39  ;;  %v919_v10 = vld [vmem:[#allocation6 + $0x118] sm:$0xff]  ;;  %v918_v13 = vld [vmem:[#allocation6 + $0x110] sm:$0xff]  ;;  %v885_v16 = vld [vmem:[#allocation6 + $0x8] sm:$0xff] }
 0x1c7   : > { %1996 = vmatpush3.xpose.msra.mxu1 %v927_v40  ;;  %1915 = vmatprep.subr.mxu0 %v910_v41  ;;  %v917_v17 = vld [vmem:[#allocation6 + $0x108] sm:$0xff]  ;;  %v900_v18 = vld [vmem:[#allocation6 + $0x80] sm:$0xff]  ;;  %v860_v22 = vld [vmem:[#allocation2] sm:$0xff] }
 0x1c8   : > { %1997 = vmatprep.subr.mxu1 %v942_v42  ;;  %v932_v19 = vld [vmem:[#allocation6 + $0x180] sm:$0xff]  ;;  %v861_v23 = vld [vmem:[#allocation2 + $0x10] sm:$0xff]  ;;  %v863_v25 = vld [vmem:[#allocation2 + $0x60] sm:$0xff] }
 0x1c9   : > { %v884_v20 = vld [vmem:[#allocation6] sm:$0xff]  ;;  %v865_v27 = vld [vmem:[#allocation2 + $0x40] sm:$0xff]  ;;  %v866_v28 = vld [vmem:[#allocation2 + $0x78] sm:$0xff] }
 0x1ca   : > { %1916 = vmatpush3.xpose.msra.mxu0 %v894_v43  ;;  %v916_v21 = vld [vmem:[#allocation6 + $0x100] sm:$0xff]  ;;  %v867_v29 = vld [vmem:[#allocation2 + $0x80] sm:$0xff]  ;;  %v869_v31 = vld [vmem:[#allocation2 + $0xb8] sm:$0xff] }
 0x1cb   : > { %1998 = vmatpush3.xpose.msra.mxu1 %v926_v44  ;;  %1917 = vmatprep.subr.mxu0 %v909_v45  ;;  %v862_v24 = vld [vmem:[#allocation2 + $0x48] sm:$0xff]  ;;  %v870_v32 = vld [vmem:[#allocation2 + $0x70] sm:$0xff]  ;;  %v871_v33 = vld [vmem:[#allocation2 + $0x18] sm:$0xff] }
 0x1cc   : > { %1999 = vmatprep.subr.mxu1 %v941_v46  ;;  %v864_v26 = vld [vmem:[#allocation2 + $0x28] sm:$0xff]  ;;  %v873_v35 = vld [vmem:[#allocation2 + $0x98] sm:$0xff]  ;;  %v874_v36 = vld [vmem:[#allocation2 + $0xa0] sm:$0xff] }
 0x1cd   : > { %v868_v30 = vld [vmem:[#allocation2 + $0x88] sm:$0xff]  ;;  %v875_v37 = vld [vmem:[#allocation2 + $0x20] sm:$0xff]  ;;  %v876_v38 = vld [vmem:[#allocation2 + $0x30] sm:$0xff] }
 0x1ce   : > { %1918 = vmatpush3.xpose.msra.mxu0 %v893_v48  ;;  %v872_v34 = vld [vmem:[#allocation2 + $0x68] sm:$0xff]  ;;  %v877_v39 = vld [vmem:[#allocation2 + $0x90] sm:$0xff]  ;;  %v878_v40 = vld [vmem:[#allocation2 + $0x38] sm:$0xff] }
 0x1cf   : > { %2000 = vmatpush3.xpose.msra.mxu1 %v925_v49  ;;  %1919 = vmatprep.subr.mxu0 %v908_v50  ;;  %v879_v41 = vld [vmem:[#allocation2 + $0x58] sm:$0xff]  ;;  %v880_v42 = vld [vmem:[#allocation2 + $0x50] sm:$0xff]  ;;  %v881_v43 = vld [vmem:[#allocation2 + $0x8] sm:$0xff] }
 0x1d0   : > { %2001 = vmatprep.subr.mxu1 %v940_v51  ;;  %v882_v44 = vld [vmem:[#allocation2 + $0xa8] sm:$0xff]  ;;  %v883_v45 = vld [vmem:[#allocation2 + $0xc0] sm:$0xff]  ;;  %v1379_v50 = vld [vmem:[#allocation3 + $0x8] sm:$0xff] }
 0x1d1   : > { %v1378_v46 = vld [vmem:[#allocation3] sm:$0xff]  ;;  %v1381_v51 = vld [vmem:[#allocation3 + $0x18] sm:$0xff] }
 0x1d2   : > { %1920 = vmatpush3.xpose.msra.mxu0 %v892_v52 }
 0x1d3   : > { %2002 = vmatpush3.xpose.msra.mxu1 %v924_v53  ;;  %1921 = vmatprep.subr.mxu0 %v907_v54 }
 0x1d4   : > { %2003 = vmatprep.subr.mxu1 %v939_v55 }
 0x1d6   : > { %1922 = vmatpush3.xpose.msra.mxu0 %v891_v56  ;;  %v1382_v56 = vld [vmem:[#allocation3 + $0x20] sm:$0xff] }
 0x1d7   : > { %2004 = vmatpush3.xpose.msra.mxu1 %v923_v57  ;;  %1923 = vmatprep.subr.mxu0 %v906_v58  ;;  %v1384_v57 = vld [vmem:[#allocation3 + $0x30] sm:$0xff] }
 0x1d8   : > { %2005 = vmatprep.subr.mxu1 %v938_v59 }
 0x1da   : > { %1924 = vmatpush3.xpose.msra.mxu0 %v890_v60 }
 0x1db   : > { %2006 = vmatpush3.xpose.msra.mxu1 %v922_v61  ;;  %1925 = vmatprep.subr.mxu0 %v905_v62 }
 0x1dc   : > { %2007 = vmatprep.subr.mxu1 %v937_v63 }
 0x1de   : > { %1926 = vmatpush3.xpose.msra.mxu0 %v889_v0  ;;  %v1383_v0 = vld [vmem:[#allocation3 + $0x28] sm:$0xff] }
 0x1df   : > { %2008 = vmatpush3.xpose.msra.mxu1 %v921_v1  ;;  %1927 = vmatprep.subr.mxu0 %v904_v2  ;;  %v1385_v1 = vld [vmem:[#allocation3 + $0x38] sm:$0xff] }
 0x1e0   : > { %2009 = vmatprep.subr.mxu1 %v936_v4 }
 0x1e2   : > { %1928 = vmatpush3.xpose.msra.mxu0 %v888_v5 }
 0x1e3   : > { %2010 = vmatpush3.xpose.msra.mxu1 %v920_v6  ;;  %1929 = vmatprep.subr.mxu0 %v903_v7 }
 0x1e4   : > { %2011 = vmatprep.subr.mxu1 %v935_v8 }
 0x1e6   : > { %1930 = vmatpush3.xpose.msra.mxu0 %v887_v9  ;;  %v1386_v9 = vld [vmem:[#allocation3 + $0x40] sm:$0xff] }
 0x1e7   : > { %2012 = vmatpush3.xpose.msra.mxu1 %v919_v10  ;;  %1931 = vmatprep.subr.mxu0 %v902_v11  ;;  %v1388_v10 = vld [vmem:[#allocation3 + $0x50] sm:$0xff] }
 0x1e8   : > { %2013 = vmatprep.subr.mxu1 %v934_v12 }
 0x1ea   : > { %1932 = vmatpush3.xpose.msra.mxu0 %v886_v3 }
 0x1eb   : > { %2014 = vmatpush3.xpose.msra.mxu1 %v918_v13  ;;  %1933 = vmatprep.subr.mxu0 %v901_v14 }
 0x1ec   : > { %2015 = vmatprep.subr.mxu1 %v933_v15 }
 0x1ee   : > { %1934 = vmatpush3.xpose.msra.mxu0 %v885_v16  ;;  %v1387_v16 = vld [vmem:[#allocation3 + $0x48] sm:$0xff] }
 0x1ef   : > { %2016 = vmatpush3.xpose.msra.mxu1 %v917_v17  ;;  %1935 = vmatprep.subr.mxu0 %v900_v18  ;;  %v1389_v17 = vld [vmem:[#allocation3 + $0x58] sm:$0xff] }
 0x1f0   : > { %2017 = vmatprep.subr.mxu1 %v932_v19 }
 0x1f2   : > { %1936 = vmatpush3.xpose.msra.mxu0 %v884_v20 }
 0x1f3   : > { %2018 = vmatpush3.xpose.msra.mxu1 %v916_v21 }
 0x1f5   : > { %1938 = vmatmul.mubr.f32.vlgmr.msra.gmra.mxu0 %v2407_v47 }
 0x1f6   : > { %2020 = vmatmul.mubr.f32.vlgmr.msra.gmra.mxu1 %v2407_v47  ;;  %1939 = vmatprep.mubr.f32.mxu0 %v860_v22  ;;  %v1380_v47 = vld [vmem:[#allocation3 + $0x10] sm:$0xff] }
 0x1f7   : > { %2021 = vmatprep.mubr.f32.mxu1 %v860_v22 }
 0x1f9   : > { %1940 = vmatmul.mubr.f32.gmra.mxu0 %v860_v22 }
 0x1fa   : > { %2022 = vmatmul.mubr.f32.gmra.mxu1 %v860_v22  ;;  %1941 = vmatprep.mubr.f32.mxu0 %v861_v23 }
 0x1fb   : > { %2023 = vmatprep.mubr.f32.mxu1 %v861_v23 }
 0x1fd   : > { %1942 = vmatmul.mubr.f32.gmra.mxu0 %v861_v23 }
 0x1fe   : > { %2024 = vmatmul.mubr.f32.gmra.mxu1 %v861_v23  ;;  %1943 = vmatprep.mubr.f32.mxu0 %v862_v24 }
 0x1ff   : > { %2025 = vmatprep.mubr.f32.mxu1 %v862_v24 }
 0x201   : > { %1944 = vmatmul.mubr.f32.gmra.mxu0 %v862_v24 }
 0x202   : > { %2026 = vmatmul.mubr.f32.gmra.mxu1 %v862_v24  ;;  %1945 = vmatprep.mubr.f32.mxu0 %v863_v25  ;;  %v1390_v24 = vld [vmem:[#allocation3 + $0x60] sm:$0xff] }
 0x203   : > { %2027 = vmatprep.mubr.f32.mxu1 %v863_v25 }
 0x205   : > { %1946 = vmatmul.mubr.f32.gmra.mxu0 %v863_v25 }
 0x206   : > { %2028 = vmatmul.mubr.f32.gmra.mxu1 %v863_v25  ;;  %1947 = vmatprep.mubr.f32.mxu0 %v864_v26  ;;  %v1392_v25 = vld [vmem:[#allocation3 + $0x70] sm:$0xff] }
 0x207   : > { %2029 = vmatprep.mubr.f32.mxu1 %v864_v26 }
 0x209   : > { %1948 = vmatmul.mubr.f32.gmra.mxu0 %v864_v26 }
 0x20a   : > { %2030 = vmatmul.mubr.f32.gmra.mxu1 %v864_v26  ;;  %1949 = vmatprep.mubr.f32.mxu0 %v865_v27 }
 0x20b   : > { %2031 = vmatprep.mubr.f32.mxu1 %v865_v27 }
 0x20d   : > { %1950 = vmatmul.mubr.f32.gmra.mxu0 %v865_v27 }
 0x20e   : > { %2032 = vmatmul.mubr.f32.gmra.mxu1 %v865_v27  ;;  %1951 = vmatprep.mubr.f32.mxu0 %v866_v28 }
 0x20f   : > { %2033 = vmatprep.mubr.f32.mxu1 %v866_v28 }
 0x211   : > { %1952 = vmatmul.mubr.f32.gmra.mxu0 %v866_v28 }
 0x212   : > { %2034 = vmatmul.mubr.f32.gmra.mxu1 %v866_v28  ;;  %1953 = vmatprep.mubr.f32.mxu0 %v867_v29 }
 0x213   : > { %2035 = vmatprep.mubr.f32.mxu1 %v867_v29 }
 0x215   : > { %1954 = vmatmul.mubr.f32.gmra.mxu0 %v867_v29 }
 0x216   : > { %2036 = vmatmul.mubr.f32.gmra.mxu1 %v867_v29  ;;  %1955 = vmatprep.mubr.f32.mxu0 %v868_v30 }
 0x217   : > { %2037 = vmatprep.mubr.f32.mxu1 %v868_v30 }
 0x219   : > { %1956 = vmatmul.mubr.f32.gmra.mxu0 %v868_v30 }
 0x21a   : > { %2038 = vmatmul.mubr.f32.gmra.mxu1 %v868_v30  ;;  %1957 = vmatprep.mubr.f32.mxu0 %v869_v31 }
 0x21b   : > { %2039 = vmatprep.mubr.f32.mxu1 %v869_v31 }
 0x21d   : > { %1958 = vmatmul.mubr.f32.gmra.mxu0 %v869_v31 }
 0x21e   : > { %2040 = vmatmul.mubr.f32.gmra.mxu1 %v869_v31  ;;  %1959 = vmatprep.mubr.f32.mxu0 %v870_v32 }
 0x21f   : > { %2041 = vmatprep.mubr.f32.mxu1 %v870_v32 }
 0x221   : > { %1960 = vmatmul.mubr.f32.gmra.mxu0 %v870_v32 }
 0x222   : > { %2042 = vmatmul.mubr.f32.gmra.mxu1 %v870_v32  ;;  %1961 = vmatprep.mubr.f32.mxu0 %v871_v33  ;;  %v1391_v32 = vld [vmem:[#allocation3 + $0x68] sm:$0xff] }
 0x223   : > { %2043 = vmatprep.mubr.f32.mxu1 %v871_v33 }
 0x225   : > { %1962 = vmatmul.mubr.f32.gmra.mxu0 %v871_v33 }
 0x226   : > { %2044 = vmatmul.mubr.f32.gmra.mxu1 %v871_v33  ;;  %1963 = vmatprep.mubr.f32.mxu0 %v872_v34  ;;  %v1393_v33 = vld [vmem:[#allocation3 + $0x78] sm:$0xff] }
 0x227   : > { %2045 = vmatprep.mubr.f32.mxu1 %v872_v34 }
 0x229   : > { %1964 = vmatmul.mubr.f32.gmra.mxu0 %v872_v34 }
 0x22a   : > { %2046 = vmatmul.mubr.f32.gmra.mxu1 %v872_v34  ;;  %1965 = vmatprep.mubr.f32.mxu0 %v873_v35 }
 0x22b   : > { %2047 = vmatprep.mubr.f32.mxu1 %v873_v35 }
 0x22d   : > { %1966 = vmatmul.mubr.f32.gmra.mxu0 %v873_v35 }
 0x22e   : > { %2048 = vmatmul.mubr.f32.gmra.mxu1 %v873_v35  ;;  %1967 = vmatprep.mubr.f32.mxu0 %v874_v36 }
 0x22f   : > { %2049 = vmatprep.mubr.f32.mxu1 %v874_v36 }
 0x231   : > { %1968 = vmatmul.mubr.f32.gmra.mxu0 %v874_v36 }
 0x232   : > { %2050 = vmatmul.mubr.f32.gmra.mxu1 %v874_v36  ;;  %1969 = vmatprep.mubr.f32.mxu0 %v875_v37 }
 0x233   : > { %2051 = vmatprep.mubr.f32.mxu1 %v875_v37 }
 0x235   : > { %1970 = vmatmul.mubr.f32.gmra.mxu0 %v875_v37 }
 0x236   : > { %2052 = vmatmul.mubr.f32.gmra.mxu1 %v875_v37  ;;  %1971 = vmatprep.mubr.f32.mxu0 %v876_v38 }
 0x237   : > { %2053 = vmatprep.mubr.f32.mxu1 %v876_v38 }
 0x239   : > { %1972 = vmatmul.mubr.f32.gmra.mxu0 %v876_v38 }
 0x23a   : > { %2054 = vmatmul.mubr.f32.gmra.mxu1 %v876_v38  ;;  %1973 = vmatprep.mubr.f32.mxu0 %v877_v39 }
 0x23b   : > { %2055 = vmatprep.mubr.f32.mxu1 %v877_v39 }
 0x23d   : > { %1974 = vmatmul.mubr.f32.gmra.mxu0 %v877_v39 }
 0x23e   : > { %2056 = vmatmul.mubr.f32.gmra.mxu1 %v877_v39  ;;  %1975 = vmatprep.mubr.f32.mxu0 %v878_v40 }
 0x23f   : > { %2057 = vmatprep.mubr.f32.mxu1 %v878_v40 }
 0x241   : > { %1976 = vmatmul.mubr.f32.gmra.mxu0 %v878_v40 }
 0x242   : > { %2058 = vmatmul.mubr.f32.gmra.mxu1 %v878_v40  ;;  %1977 = vmatprep.mubr.f32.mxu0 %v879_v41  ;;  %v1394_v40 = vld [vmem:[#allocation3 + $0x80] sm:$0xff] }
 0x243   : > { %2059 = vmatprep.mubr.f32.mxu1 %v879_v41 }
 0x245   : > { %1978 = vmatmul.mubr.f32.gmra.mxu0 %v879_v41 }
 0x246   : > { %2060 = vmatmul.mubr.f32.gmra.mxu1 %v879_v41  ;;  %1979 = vmatprep.mubr.f32.mxu0 %v880_v42  ;;  %v1396_v41 = vld [vmem:[#allocation3 + $0x90] sm:$0xff] }
 0x247   : > { %2061 = vmatprep.mubr.f32.mxu1 %v880_v42 }
 0x249   : > { %1980 = vmatmul.mubr.f32.gmra.mxu0 %v880_v42 }
 0x24a   : > { %2062 = vmatmul.mubr.f32.gmra.mxu1 %v880_v42  ;;  %1981 = vmatprep.mubr.f32.mxu0 %v881_v43 }
 0x24b   : > { %2063 = vmatprep.mubr.f32.mxu1 %v881_v43 }
 0x24d   : > { %1982 = vmatmul.mubr.f32.gmra.mxu0 %v881_v43 }
 0x24e   : > { %2064 = vmatmul.mubr.f32.gmra.mxu1 %v881_v43  ;;  %1983 = vmatprep.mubr.f32.mxu0 %v882_v44 }
 0x24f   : > { %2065 = vmatprep.mubr.f32.mxu1 %v882_v44 }
 0x251   : > { %1984 = vmatmul.mubr.f32.gmra.mxu0 %v882_v44 }
 0x252   : > { %2066 = vmatmul.mubr.f32.gmra.mxu1 %v882_v44  ;;  %1985 = vmatprep.mubr.f32.mxu0 %v883_v45 }
 0x253   : > { %2067 = vmatprep.mubr.f32.mxu1 %v883_v45 }
 0x255   : > { %1986 = vmatmul.mubr.f32.gmra.mxu0 %v883_v45 }
 0x256   : > { %2068 = vmatmul.mubr.f32.gmra.mxu1 %v883_v45 }
 0x2b5   : > { %v1014_v48 = vpop.f32.mrf.mxu0 }
 0x2b6   : > { %v1229_v49 = vpop.f32.mrf.mxu1  ;;  %v1478_v52 = vsub.f32 %v1014_v48, %v1378_v46  ;;  %v1395_v48 = vld [vmem:[#allocation3 + $0x88] sm:$0xff] }
 0x2b7   : > { %v1480_v53 = vsub.f32 %v1229_v49, %v1380_v47  ;;  %v1016_v54 = vpop.f32.mrf.mxu0  ;;  %v1397_v49 = vld [vmem:[#allocation3 + $0x98] sm:$0xff] }
 0x2b8   : > { %v1231_v55 = vpop.f32.mrf.mxu1  ;;  %v1578_v58 = vmax.f32 %v1478_v52, 0.0  ;;  %v1479_v60 = vsub.f32 %v1016_v54, %v1379_v50 }
 0x2b9   : > { %v1580_v59 = vmax.f32 %v1480_v53, 0.0  ;;  %v1481_v61 = vsub.f32 %v1231_v55, %v1381_v51  ;;  %v1020_v62 = vpop.f32.mrf.mxu0 }
 0x2ba   : > { %v1235_v63 = vpop.f32.mrf.mxu1  ;;  %1678 = vst [vmem:[#allocation8] sm:$0xff] %v1578_v58  ;;  %v1579_v2 = vmax.f32 %v1479_v60, 0.0  ;;  %v1482_v5 = vsub.f32 %v1020_v62, %v1382_v56  ;;  %v1398_v56 = vld [vmem:[#allocation3 + $0xa0] sm:$0xff] }
 0x2bb   : > { %1680 = vst [vmem:[#allocation8 + $0x10] sm:$0xff] %v1580_v59  ;;  %v1581_v4 = vmax.f32 %v1481_v61, 0.0  ;;  %v1484_v6 = vsub.f32 %v1235_v63, %v1384_v57  ;;  %v1022_v7 = vpop.f32.mrf.mxu0  ;;  %v1400_v57 = vld [vmem:[#allocation3 + $0xb0] sm:$0xff] }
 0x2bc   : > { %v1237_v8 = vpop.f32.mrf.mxu1  ;;  %1679 = vst [vmem:[#allocation8 + $0x8] sm:$0xff] %v1579_v2  ;;  %v1582_v11 = vmax.f32 %v1482_v5, 0.0  ;;  %v1483_v3 = vsub.f32 %v1022_v7, %v1383_v0  ;;  %v1399_v0 = vld [vmem:[#allocation3 + $0xa8] sm:$0xff] }
 0x2bd   : > { %1681 = vst [vmem:[#allocation8 + $0x18] sm:$0xff] %v1581_v4  ;;  %v1584_v12 = vmax.f32 %v1484_v6, 0.0  ;;  %v1485_v13 = vsub.f32 %v1237_v8, %v1385_v1  ;;  %v1026_v14 = vpop.f32.mrf.mxu0  ;;  %v1401_v1 = vld [vmem:[#allocation3 + $0xb8] sm:$0xff] }
 0x2be   : > { %v1241_v15 = vpop.f32.mrf.mxu1  ;;  %1682 = vst [vmem:[#allocation8 + $0x20] sm:$0xff] %v1582_v11  ;;  %v1583_v18 = vmax.f32 %v1483_v3, 0.0  ;;  %v1486_v20 = vsub.f32 %v1026_v14, %v1386_v9  ;;  %v1402_v9 = vld [vmem:[#allocation3 + $0xc0] sm:$0xff] }
 0x2bf   : > { %1684 = vst [vmem:[#allocation8 + $0x30] sm:$0xff] %v1584_v12  ;;  %v1585_v19 = vmax.f32 %v1485_v13, 0.0  ;;  %v1488_v21 = vsub.f32 %v1241_v15, %v1388_v10  ;;  %v1028_v22 = vpop.f32.mrf.mxu0  ;;  %v1404_v10 = vld [vmem:[#allocation3 + $0xd0] sm:$0xff] }
 0x2c0   : > { %v1243_v23 = vpop.f32.mrf.mxu1  ;;  %1683 = vst [vmem:[#allocation8 + $0x28] sm:$0xff] %v1583_v18  ;;  %v1586_v26 = vmax.f32 %v1486_v20, 0.0  ;;  %v1487_v28 = vsub.f32 %v1028_v22, %v1387_v16  ;;  %v1403_v16 = vld [vmem:[#allocation3 + $0xc8] sm:$0xff] }
 0x2c1   : > { %1685 = vst [vmem:[#allocation8 + $0x38] sm:$0xff] %v1585_v19  ;;  %v1588_v27 = vmax.f32 %v1488_v21, 0.0  ;;  %v1489_v29 = vsub.f32 %v1243_v23, %v1389_v17  ;;  %v1032_v30 = vpop.f32.mrf.mxu0  ;;  %v1405_v17 = vld [vmem:[#allocation3 + $0xd8] sm:$0xff] }
 0x2c2   : > { %v1247_v31 = vpop.f32.mrf.mxu1  ;;  %1686 = vst [vmem:[#allocation8 + $0x40] sm:$0xff] %v1586_v26  ;;  %v1587_v34 = vmax.f32 %v1487_v28, 0.0  ;;  %v1490_v36 = vsub.f32 %v1032_v30, %v1390_v24  ;;  %v1406_v24 = vld [vmem:[#allocation3 + $0xe0] sm:$0xff] }
 0x2c3   : > { %1688 = vst [vmem:[#allocation8 + $0x50] sm:$0xff] %v1588_v27  ;;  %v1589_v35 = vmax.f32 %v1489_v29, 0.0  ;;  %v1492_v37 = vsub.f32 %v1247_v31, %v1392_v25  ;;  %v1034_v38 = vpop.f32.mrf.mxu0  ;;  %v1408_v25 = vld [vmem:[#allocation3 + $0xf0] sm:$0xff] }
 0x2c4   : > { %v1249_v39 = vpop.f32.mrf.mxu1  ;;  %1687 = vst [vmem:[#allocation8 + $0x48] sm:$0xff] %v1587_v34  ;;  %v1590_v42 = vmax.f32 %v1490_v36, 0.0  ;;  %v1491_v44 = vsub.f32 %v1034_v38, %v1391_v32  ;;  %v1407_v32 = vld [vmem:[#allocation3 + $0xe8] sm:$0xff] }
 0x2c5   : > { %1689 = vst [vmem:[#allocation8 + $0x58] sm:$0xff] %v1589_v35  ;;  %v1592_v43 = vmax.f32 %v1492_v37, 0.0  ;;  %v1493_v45 = vsub.f32 %v1249_v39, %v1393_v33  ;;  %v1038_v46 = vpop.f32.mrf.mxu0  ;;  %v1409_v33 = vld [vmem:[#allocation3 + $0xf8] sm:$0xff] }
 0x2c6   : > { %v1253_v47 = vpop.f32.mrf.mxu1  ;;  %1690 = vst [vmem:[#allocation8 + $0x60] sm:$0xff] %v1590_v42  ;;  %v1591_v50 = vmax.f32 %v1491_v44, 0.0  ;;  %v1494_v52 = vsub.f32 %v1038_v46, %v1394_v40  ;;  %v1410_v40 = vld [vmem:[#allocation3 + $0x100] sm:$0xff] }
 0x2c7   : > { %1692 = vst [vmem:[#allocation8 + $0x70] sm:$0xff] %v1592_v43  ;;  %v1593_v51 = vmax.f32 %v1493_v45, 0.0  ;;  %v1496_v53 = vsub.f32 %v1253_v47, %v1396_v41  ;;  %v1040_v54 = vpop.f32.mrf.mxu0  ;;  %v1412_v41 = vld [vmem:[#allocation3 + $0x110] sm:$0xff] }
 0x2c8   : > { %v1255_v55 = vpop.f32.mrf.mxu1  ;;  %1691 = vst [vmem:[#allocation8 + $0x68] sm:$0xff] %v1591_v50  ;;  %v1594_v58 = vmax.f32 %v1494_v52, 0.0  ;;  %v1495_v60 = vsub.f32 %v1040_v54, %v1395_v48  ;;  %v1411_v48 = vld [vmem:[#allocation3 + $0x108] sm:$0xff] }
 0x2c9   : > { %1693 = vst [vmem:[#allocation8 + $0x78] sm:$0xff] %v1593_v51  ;;  %v1596_v59 = vmax.f32 %v1496_v53, 0.0  ;;  %v1497_v61 = vsub.f32 %v1255_v55, %v1397_v49  ;;  %v1044_v62 = vpop.f32.mrf.mxu0  ;;  %v1413_v49 = vld [vmem:[#allocation3 + $0x118] sm:$0xff] }
 0x2ca   : > { %v1259_v63 = vpop.f32.mrf.mxu1  ;;  %1694 = vst [vmem:[#allocation8 + $0x80] sm:$0xff] %v1594_v58  ;;  %v1595_v2 = vmax.f32 %v1495_v60, 0.0  ;;  %v1498_v5 = vsub.f32 %v1044_v62, %v1398_v56  ;;  %v1414_v56 = vld [vmem:[#allocation3 + $0x120] sm:$0xff] }
 0x2cb   : > { %1696 = vst [vmem:[#allocation8 + $0x90] sm:$0xff] %v1596_v59  ;;  %v1597_v4 = vmax.f32 %v1497_v61, 0.0  ;;  %v1500_v6 = vsub.f32 %v1259_v63, %v1400_v57  ;;  %v1046_v7 = vpop.f32.mrf.mxu0  ;;  %v1416_v57 = vld [vmem:[#allocation3 + $0x130] sm:$0xff] }
 0x2cc   : > { %v1261_v8 = vpop.f32.mrf.mxu1  ;;  %1695 = vst [vmem:[#allocation8 + $0x88] sm:$0xff] %v1595_v2  ;;  %v1598_v11 = vmax.f32 %v1498_v5, 0.0  ;;  %v1499_v3 = vsub.f32 %v1046_v7, %v1399_v0  ;;  %v1415_v0 = vld [vmem:[#allocation3 + $0x128] sm:$0xff] }
 0x2cd   : > { %1697 = vst [vmem:[#allocation8 + $0x98] sm:$0xff] %v1597_v4  ;;  %v1600_v12 = vmax.f32 %v1500_v6, 0.0  ;;  %v1501_v13 = vsub.f32 %v1261_v8, %v1401_v1  ;;  %v1050_v14 = vpop.f32.mrf.mxu0  ;;  %v1417_v1 = vld [vmem:[#allocation3 + $0x138] sm:$0xff] }
 0x2ce   : > { %v1265_v15 = vpop.f32.mrf.mxu1  ;;  %1698 = vst [vmem:[#allocation8 + $0xa0] sm:$0xff] %v1598_v11  ;;  %v1599_v18 = vmax.f32 %v1499_v3, 0.0  ;;  %v1502_v20 = vsub.f32 %v1050_v14, %v1402_v9  ;;  %v1418_v9 = vld [vmem:[#allocation3 + $0x140] sm:$0xff] }
 0x2cf   : > { %1700 = vst [vmem:[#allocation8 + $0xb0] sm:$0xff] %v1600_v12  ;;  %v1601_v19 = vmax.f32 %v1501_v13, 0.0  ;;  %v1504_v21 = vsub.f32 %v1265_v15, %v1404_v10  ;;  %v1052_v22 = vpop.f32.mrf.mxu0  ;;  %v1420_v10 = vld [vmem:[#allocation3 + $0x150] sm:$0xff] }
 0x2d0   : > { %v1267_v23 = vpop.f32.mrf.mxu1  ;;  %1699 = vst [vmem:[#allocation8 + $0xa8] sm:$0xff] %v1599_v18  ;;  %v1602_v26 = vmax.f32 %v1502_v20, 0.0  ;;  %v1503_v28 = vsub.f32 %v1052_v22, %v1403_v16  ;;  %v1419_v16 = vld [vmem:[#allocation3 + $0x148] sm:$0xff] }
 0x2d1   : > { %1701 = vst [vmem:[#allocation8 + $0xb8] sm:$0xff] %v1601_v19  ;;  %v1604_v27 = vmax.f32 %v1504_v21, 0.0  ;;  %v1505_v29 = vsub.f32 %v1267_v23, %v1405_v17  ;;  %v1056_v30 = vpop.f32.mrf.mxu0  ;;  %v1421_v17 = vld [vmem:[#allocation3 + $0x158] sm:$0xff] }
 0x2d2   : > { %v1271_v31 = vpop.f32.mrf.mxu1  ;;  %1702 = vst [vmem:[#allocation8 + $0xc0] sm:$0xff] %v1602_v26  ;;  %v1603_v34 = vmax.f32 %v1503_v28, 0.0  ;;  %v1506_v36 = vsub.f32 %v1056_v30, %v1406_v24  ;;  %v1422_v24 = vld [vmem:[#allocation3 + $0x160] sm:$0xff] }
 0x2d3   : > { %1704 = vst [vmem:[#allocation8 + $0xd0] sm:$0xff] %v1604_v27  ;;  %v1605_v35 = vmax.f32 %v1505_v29, 0.0  ;;  %v1508_v37 = vsub.f32 %v1271_v31, %v1408_v25  ;;  %v1058_v38 = vpop.f32.mrf.mxu0  ;;  %v1424_v25 = vld [vmem:[#allocation3 + $0x170] sm:$0xff] }
 0x2d4   : > { %v1273_v39 = vpop.f32.mrf.mxu1  ;;  %1703 = vst [vmem:[#allocation8 + $0xc8] sm:$0xff] %v1603_v34  ;;  %v1606_v42 = vmax.f32 %v1506_v36, 0.0  ;;  %v1507_v44 = vsub.f32 %v1058_v38, %v1407_v32  ;;  %v1423_v32 = vld [vmem:[#allocation3 + $0x168] sm:$0xff] }
 0x2d5   : > { %1705 = vst [vmem:[#allocation8 + $0xd8] sm:$0xff] %v1605_v35  ;;  %v1608_v43 = vmax.f32 %v1508_v37, 0.0  ;;  %v1509_v45 = vsub.f32 %v1273_v39, %v1409_v33  ;;  %v1062_v46 = vpop.f32.mrf.mxu0  ;;  %v1425_v33 = vld [vmem:[#allocation3 + $0x178] sm:$0xff] }
 0x2d6   : > { %v1277_v47 = vpop.f32.mrf.mxu1  ;;  %1706 = vst [vmem:[#allocation8 + $0xe0] sm:$0xff] %v1606_v42  ;;  %v1607_v50 = vmax.f32 %v1507_v44, 0.0  ;;  %v1510_v52 = vsub.f32 %v1062_v46, %v1410_v40  ;;  %v1426_v40 = vld [vmem:[#allocation3 + $0x180] sm:$0xff] }
 0x2d7   : > { %1708 = vst [vmem:[#allocation8 + $0xf0] sm:$0xff] %v1608_v43  ;;  %v1609_v51 = vmax.f32 %v1509_v45, 0.0  ;;  %v1512_v53 = vsub.f32 %v1277_v47, %v1412_v41  ;;  %v1064_v54 = vpop.f32.mrf.mxu0  ;;  %v1428_v41 = vld [vmem:[#allocation3 + $0x190] sm:$0xff] }
 0x2d8   : > { %v1279_v55 = vpop.f32.mrf.mxu1  ;;  %1707 = vst [vmem:[#allocation8 + $0xe8] sm:$0xff] %v1607_v50  ;;  %v1610_v58 = vmax.f32 %v1510_v52, 0.0  ;;  %v1511_v60 = vsub.f32 %v1064_v54, %v1411_v48  ;;  %v1427_v48 = vld [vmem:[#allocation3 + $0x188] sm:$0xff] }
 0x2d9   : > { %1709 = vst [vmem:[#allocation8 + $0xf8] sm:$0xff] %v1609_v51  ;;  %v1612_v59 = vmax.f32 %v1512_v53, 0.0  ;;  %v1513_v61 = vsub.f32 %v1279_v55, %v1413_v49  ;;  %v1068_v62 = vpop.f32.mrf.mxu0  ;;  %v1429_v49 = vld [vmem:[#allocation3 + $0x198] sm:$0xff] }
 0x2da   : > { %v1283_v63 = vpop.f32.mrf.mxu1  ;;  %1710 = vst [vmem:[#allocation8 + $0x100] sm:$0xff] %v1610_v58  ;;  %v1611_v2 = vmax.f32 %v1511_v60, 0.0  ;;  %v1514_v5 = vsub.f32 %v1068_v62, %v1414_v56  ;;  %v1430_v56 = vld [vmem:[#allocation3 + $0x1a0] sm:$0xff] }
 0x2db   : > { %1712 = vst [vmem:[#allocation8 + $0x110] sm:$0xff] %v1612_v59  ;;  %v1613_v4 = vmax.f32 %v1513_v61, 0.0  ;;  %v1516_v6 = vsub.f32 %v1283_v63, %v1416_v57  ;;  %v1070_v7 = vpop.f32.mrf.mxu0  ;;  %v1432_v57 = vld [vmem:[#allocation3 + $0x1b0] sm:$0xff] }
 0x2dc   : > { %v1285_v8 = vpop.f32.mrf.mxu1  ;;  %1711 = vst [vmem:[#allocation8 + $0x108] sm:$0xff] %v1611_v2  ;;  %v1614_v11 = vmax.f32 %v1514_v5, 0.0  ;;  %v1515_v3 = vsub.f32 %v1070_v7, %v1415_v0  ;;  %v1431_v0 = vld [vmem:[#allocation3 + $0x1a8] sm:$0xff] }
 0x2dd   : > { %1713 = vst [vmem:[#allocation8 + $0x118] sm:$0xff] %v1613_v4  ;;  %v1616_v12 = vmax.f32 %v1516_v6, 0.0  ;;  %v1517_v13 = vsub.f32 %v1285_v8, %v1417_v1  ;;  %v1074_v14 = vpop.f32.mrf.mxu0  ;;  %v1433_v1 = vld [vmem:[#allocation3 + $0x1b8] sm:$0xff] }
 0x2de   : > { %v1289_v15 = vpop.f32.mrf.mxu1  ;;  %1714 = vst [vmem:[#allocation8 + $0x120] sm:$0xff] %v1614_v11  ;;  %v1615_v18 = vmax.f32 %v1515_v3, 0.0  ;;  %v1518_v20 = vsub.f32 %v1074_v14, %v1418_v9  ;;  %v1434_v9 = vld [vmem:[#allocation3 + $0x1c0] sm:$0xff] }
 0x2df   : > { %1716 = vst [vmem:[#allocation8 + $0x130] sm:$0xff] %v1616_v12  ;;  %v1617_v19 = vmax.f32 %v1517_v13, 0.0  ;;  %v1520_v21 = vsub.f32 %v1289_v15, %v1420_v10  ;;  %v1076_v22 = vpop.f32.mrf.mxu0  ;;  %v1436_v10 = vld [vmem:[#allocation3 + $0x1d0] sm:$0xff] }
 0x2e0   : > { %v1291_v23 = vpop.f32.mrf.mxu1  ;;  %1715 = vst [vmem:[#allocation8 + $0x128] sm:$0xff] %v1615_v18  ;;  %v1618_v26 = vmax.f32 %v1518_v20, 0.0  ;;  %v1519_v28 = vsub.f32 %v1076_v22, %v1419_v16  ;;  %v1435_v16 = vld [vmem:[#allocation3 + $0x1c8] sm:$0xff] }
 0x2e1   : > { %1717 = vst [vmem:[#allocation8 + $0x138] sm:$0xff] %v1617_v19  ;;  %v1620_v27 = vmax.f32 %v1520_v21, 0.0  ;;  %v1521_v29 = vsub.f32 %v1291_v23, %v1421_v17  ;;  %v1080_v30 = vpop.f32.mrf.mxu0  ;;  %v1437_v17 = vld [vmem:[#allocation3 + $0x1d8] sm:$0xff] }
 0x2e2   : > { %v1295_v31 = vpop.f32.mrf.mxu1  ;;  %1718 = vst [vmem:[#allocation8 + $0x140] sm:$0xff] %v1618_v26  ;;  %v1619_v34 = vmax.f32 %v1519_v28, 0.0  ;;  %v1522_v36 = vsub.f32 %v1080_v30, %v1422_v24  ;;  %v1438_v24 = vld [vmem:[#allocation3 + $0x1e0] sm:$0xff] }
 0x2e3   : > { %1720 = vst [vmem:[#allocation8 + $0x150] sm:$0xff] %v1620_v27  ;;  %v1621_v35 = vmax.f32 %v1521_v29, 0.0  ;;  %v1524_v37 = vsub.f32 %v1295_v31, %v1424_v25  ;;  %v1082_v38 = vpop.f32.mrf.mxu0  ;;  %v1440_v25 = vld [vmem:[#allocation3 + $0x1f0] sm:$0xff] }
 0x2e4   : > { %v1297_v39 = vpop.f32.mrf.mxu1  ;;  %1719 = vst [vmem:[#allocation8 + $0x148] sm:$0xff] %v1619_v34  ;;  %v1622_v42 = vmax.f32 %v1522_v36, 0.0  ;;  %v1523_v44 = vsub.f32 %v1082_v38, %v1423_v32  ;;  %v1439_v32 = vld [vmem:[#allocation3 + $0x1e8] sm:$0xff] }
 0x2e5   : > { %1721 = vst [vmem:[#allocation8 + $0x158] sm:$0xff] %v1621_v35  ;;  %v1624_v43 = vmax.f32 %v1524_v37, 0.0  ;;  %v1525_v45 = vsub.f32 %v1297_v39, %v1425_v33  ;;  %v1086_v46 = vpop.f32.mrf.mxu0  ;;  %v1441_v33 = vld [vmem:[#allocation3 + $0x1f8] sm:$0xff] }
 0x2e6   : > { %v1301_v47 = vpop.f32.mrf.mxu1  ;;  %1722 = vst [vmem:[#allocation8 + $0x160] sm:$0xff] %v1622_v42  ;;  %v1623_v50 = vmax.f32 %v1523_v44, 0.0  ;;  %v1526_v52 = vsub.f32 %v1086_v46, %v1426_v40  ;;  %v1442_v40 = vld [vmem:[#allocation3 + $0x200] sm:$0xff] }
 0x2e7   : > { %1724 = vst [vmem:[#allocation8 + $0x170] sm:$0xff] %v1624_v43  ;;  %v1625_v51 = vmax.f32 %v1525_v45, 0.0  ;;  %v1528_v53 = vsub.f32 %v1301_v47, %v1428_v41  ;;  %v1088_v54 = vpop.f32.mrf.mxu0  ;;  %v1444_v41 = vld [vmem:[#allocation3 + $0x210] sm:$0xff] }
 0x2e8   : > { %v1303_v55 = vpop.f32.mrf.mxu1  ;;  %1723 = vst [vmem:[#allocation8 + $0x168] sm:$0xff] %v1623_v50  ;;  %v1626_v58 = vmax.f32 %v1526_v52, 0.0  ;;  %v1527_v60 = vsub.f32 %v1088_v54, %v1427_v48  ;;  %v1443_v48 = vld [vmem:[#allocation3 + $0x208] sm:$0xff] }
 0x2e9   : > { %1725 = vst [vmem:[#allocation8 + $0x178] sm:$0xff] %v1625_v51  ;;  %v1628_v59 = vmax.f32 %v1528_v53, 0.0  ;;  %v1529_v61 = vsub.f32 %v1303_v55, %v1429_v49  ;;  %v1092_v62 = vpop.f32.mrf.mxu0  ;;  %v1445_v49 = vld [vmem:[#allocation3 + $0x218] sm:$0xff] }
 0x2ea   : > { %v1307_v63 = vpop.f32.mrf.mxu1  ;;  %1726 = vst [vmem:[#allocation8 + $0x180] sm:$0xff] %v1626_v58  ;;  %v1627_v2 = vmax.f32 %v1527_v60, 0.0  ;;  %v1530_v5 = vsub.f32 %v1092_v62, %v1430_v56  ;;  %v1446_v56 = vld [vmem:[#allocation3 + $0x220] sm:$0xff] }
 0x2eb   : > { %1728 = vst [vmem:[#allocation8 + $0x190] sm:$0xff] %v1628_v59  ;;  %v1629_v4 = vmax.f32 %v1529_v61, 0.0  ;;  %v1532_v6 = vsub.f32 %v1307_v63, %v1432_v57  ;;  %v1094_v7 = vpop.f32.mrf.mxu0  ;;  %v1448_v57 = vld [vmem:[#allocation3 + $0x230] sm:$0xff] }
 0x2ec   : > { %v1309_v8 = vpop.f32.mrf.mxu1  ;;  %1727 = vst [vmem:[#allocation8 + $0x188] sm:$0xff] %v1627_v2  ;;  %v1630_v11 = vmax.f32 %v1530_v5, 0.0  ;;  %v1531_v3 = vsub.f32 %v1094_v7, %v1431_v0  ;;  %v1447_v0 = vld [vmem:[#allocation3 + $0x228] sm:$0xff] }
 0x2ed   : > { %1729 = vst [vmem:[#allocation8 + $0x198] sm:$0xff] %v1629_v4  ;;  %v1632_v12 = vmax.f32 %v1532_v6, 0.0  ;;  %v1533_v13 = vsub.f32 %v1309_v8, %v1433_v1  ;;  %v1098_v14 = vpop.f32.mrf.mxu0  ;;  %v1449_v1 = vld [vmem:[#allocation3 + $0x238] sm:$0xff] }
 0x2ee   : > { %v1313_v15 = vpop.f32.mrf.mxu1  ;;  %1730 = vst [vmem:[#allocation8 + $0x1a0] sm:$0xff] %v1630_v11  ;;  %v1631_v18 = vmax.f32 %v1531_v3, 0.0  ;;  %v1534_v20 = vsub.f32 %v1098_v14, %v1434_v9  ;;  %v1450_v9 = vld [vmem:[#allocation3 + $0x240] sm:$0xff] }
 0x2ef   : > { %1732 = vst [vmem:[#allocation8 + $0x1b0] sm:$0xff] %v1632_v12  ;;  %v1633_v19 = vmax.f32 %v1533_v13, 0.0  ;;  %v1536_v21 = vsub.f32 %v1313_v15, %v1436_v10  ;;  %v1100_v22 = vpop.f32.mrf.mxu0  ;;  %v1452_v10 = vld [vmem:[#allocation3 + $0x250] sm:$0xff] }
 0x2f0   : > { %v1315_v23 = vpop.f32.mrf.mxu1  ;;  %1731 = vst [vmem:[#allocation8 + $0x1a8] sm:$0xff] %v1631_v18  ;;  %v1634_v26 = vmax.f32 %v1534_v20, 0.0  ;;  %v1535_v28 = vsub.f32 %v1100_v22, %v1435_v16  ;;  %v1451_v16 = vld [vmem:[#allocation3 + $0x248] sm:$0xff] }
 0x2f1   : > { %1733 = vst [vmem:[#allocation8 + $0x1b8] sm:$0xff] %v1633_v19  ;;  %v1636_v27 = vmax.f32 %v1536_v21, 0.0  ;;  %v1537_v29 = vsub.f32 %v1315_v23, %v1437_v17  ;;  %v1104_v30 = vpop.f32.mrf.mxu0  ;;  %v1453_v17 = vld [vmem:[#allocation3 + $0x258] sm:$0xff] }
 0x2f2   : > { %v1319_v31 = vpop.f32.mrf.mxu1  ;;  %1734 = vst [vmem:[#allocation8 + $0x1c0] sm:$0xff] %v1634_v26  ;;  %v1635_v34 = vmax.f32 %v1535_v28, 0.0  ;;  %v1538_v36 = vsub.f32 %v1104_v30, %v1438_v24  ;;  %v1454_v24 = vld [vmem:[#allocation3 + $0x260] sm:$0xff] }
 0x2f3   : > { %1736 = vst [vmem:[#allocation8 + $0x1d0] sm:$0xff] %v1636_v27  ;;  %v1637_v35 = vmax.f32 %v1537_v29, 0.0  ;;  %v1540_v37 = vsub.f32 %v1319_v31, %v1440_v25  ;;  %v1106_v38 = vpop.f32.mrf.mxu0  ;;  %v1456_v25 = vld [vmem:[#allocation3 + $0x270] sm:$0xff] }
 0x2f4   : > { %v1321_v39 = vpop.f32.mrf.mxu1  ;;  %1735 = vst [vmem:[#allocation8 + $0x1c8] sm:$0xff] %v1635_v34  ;;  %v1638_v42 = vmax.f32 %v1538_v36, 0.0  ;;  %v1539_v44 = vsub.f32 %v1106_v38, %v1439_v32  ;;  %v1455_v32 = vld [vmem:[#allocation3 + $0x268] sm:$0xff] }
 0x2f5   : > { %1737 = vst [vmem:[#allocation8 + $0x1d8] sm:$0xff] %v1637_v35  ;;  %v1640_v43 = vmax.f32 %v1540_v37, 0.0  ;;  %v1541_v45 = vsub.f32 %v1321_v39, %v1441_v33  ;;  %v1110_v46 = vpop.f32.mrf.mxu0  ;;  %v1457_v33 = vld [vmem:[#allocation3 + $0x278] sm:$0xff] }
 0x2f6   : > { %v1325_v47 = vpop.f32.mrf.mxu1  ;;  %1738 = vst [vmem:[#allocation8 + $0x1e0] sm:$0xff] %v1638_v42  ;;  %v1639_v50 = vmax.f32 %v1539_v44, 0.0  ;;  %v1542_v52 = vsub.f32 %v1110_v46, %v1442_v40  ;;  %v1458_v40 = vld [vmem:[#allocation3 + $0x280] sm:$0xff] }
 0x2f7   : > { %1740 = vst [vmem:[#allocation8 + $0x1f0] sm:$0xff] %v1640_v43  ;;  %v1641_v51 = vmax.f32 %v1541_v45, 0.0  ;;  %v1544_v53 = vsub.f32 %v1325_v47, %v1444_v41  ;;  %v1112_v54 = vpop.f32.mrf.mxu0  ;;  %v1460_v41 = vld [vmem:[#allocation3 + $0x290] sm:$0xff] }
 0x2f8   : > { %v1327_v55 = vpop.f32.mrf.mxu1  ;;  %1739 = vst [vmem:[#allocation8 + $0x1e8] sm:$0xff] %v1639_v50  ;;  %v1642_v58 = vmax.f32 %v1542_v52, 0.0  ;;  %v1543_v60 = vsub.f32 %v1112_v54, %v1443_v48  ;;  %v1459_v48 = vld [vmem:[#allocation3 + $0x288] sm:$0xff] }
 0x2f9   : > { %1741 = vst [vmem:[#allocation8 + $0x1f8] sm:$0xff] %v1641_v51  ;;  %v1644_v59 = vmax.f32 %v1544_v53, 0.0  ;;  %v1545_v61 = vsub.f32 %v1327_v55, %v1445_v49  ;;  %v1116_v62 = vpop.f32.mrf.mxu0  ;;  %v1461_v49 = vld [vmem:[#allocation3 + $0x298] sm:$0xff] }
 0x2fa   : > { %v1331_v63 = vpop.f32.mrf.mxu1  ;;  %1742 = vst [vmem:[#allocation8 + $0x200] sm:$0xff] %v1642_v58  ;;  %v1643_v2 = vmax.f32 %v1543_v60, 0.0  ;;  %v1546_v5 = vsub.f32 %v1116_v62, %v1446_v56  ;;  %v1462_v56 = vld [vmem:[#allocation3 + $0x2a0] sm:$0xff] }
 0x2fb   : > { %1744 = vst [vmem:[#allocation8 + $0x210] sm:$0xff] %v1644_v59  ;;  %v1645_v4 = vmax.f32 %v1545_v61, 0.0  ;;  %v1548_v6 = vsub.f32 %v1331_v63, %v1448_v57  ;;  %v1118_v7 = vpop.f32.mrf.mxu0  ;;  %v1464_v57 = vld [vmem:[#allocation3 + $0x2b0] sm:$0xff] }
 0x2fc   : > { %v1333_v8 = vpop.f32.mrf.mxu1  ;;  %1743 = vst [vmem:[#allocation8 + $0x208] sm:$0xff] %v1643_v2  ;;  %v1646_v11 = vmax.f32 %v1546_v5, 0.0  ;;  %v1547_v3 = vsub.f32 %v1118_v7, %v1447_v0  ;;  %v1463_v0 = vld [vmem:[#allocation3 + $0x2a8] sm:$0xff] }
 0x2fd   : > { %1745 = vst [vmem:[#allocation8 + $0x218] sm:$0xff] %v1645_v4  ;;  %v1648_v12 = vmax.f32 %v1548_v6, 0.0  ;;  %v1549_v13 = vsub.f32 %v1333_v8, %v1449_v1  ;;  %v1122_v14 = vpop.f32.mrf.mxu0  ;;  %v1465_v1 = vld [vmem:[#allocation3 + $0x2b8] sm:$0xff] }
 0x2fe   : > { %v1337_v15 = vpop.f32.mrf.mxu1  ;;  %1746 = vst [vmem:[#allocation8 + $0x220] sm:$0xff] %v1646_v11  ;;  %v1647_v18 = vmax.f32 %v1547_v3, 0.0  ;;  %v1550_v20 = vsub.f32 %v1122_v14, %v1450_v9  ;;  %v1466_v9 = vld [vmem:[#allocation3 + $0x2c0] sm:$0xff] }
 0x2ff   : > { %1748 = vst [vmem:[#allocation8 + $0x230] sm:$0xff] %v1648_v12  ;;  %v1649_v19 = vmax.f32 %v1549_v13, 0.0  ;;  %v1552_v21 = vsub.f32 %v1337_v15, %v1452_v10  ;;  %v1124_v22 = vpop.f32.mrf.mxu0  ;;  %v1468_v10 = vld [vmem:[#allocation3 + $0x2d0] sm:$0xff] }
 0x300   : > { %v1339_v23 = vpop.f32.mrf.mxu1  ;;  %1747 = vst [vmem:[#allocation8 + $0x228] sm:$0xff] %v1647_v18  ;;  %v1650_v26 = vmax.f32 %v1550_v20, 0.0  ;;  %v1551_v28 = vsub.f32 %v1124_v22, %v1451_v16  ;;  %v1467_v16 = vld [vmem:[#allocation3 + $0x2c8] sm:$0xff] }
 0x301   : > { %1749 = vst [vmem:[#allocation8 + $0x238] sm:$0xff] %v1649_v19  ;;  %v1652_v27 = vmax.f32 %v1552_v21, 0.0  ;;  %v1553_v29 = vsub.f32 %v1339_v23, %v1453_v17  ;;  %v1128_v30 = vpop.f32.mrf.mxu0  ;;  %v1469_v17 = vld [vmem:[#allocation3 + $0x2d8] sm:$0xff] }
 0x302   : > { %v1343_v31 = vpop.f32.mrf.mxu1  ;;  %1750 = vst [vmem:[#allocation8 + $0x240] sm:$0xff] %v1650_v26  ;;  %v1651_v34 = vmax.f32 %v1551_v28, 0.0  ;;  %v1554_v36 = vsub.f32 %v1128_v30, %v1454_v24  ;;  %v1470_v24 = vld [vmem:[#allocation3 + $0x2e0] sm:$0xff] }
 0x303   : > { %1752 = vst [vmem:[#allocation8 + $0x250] sm:$0xff] %v1652_v27  ;;  %v1653_v35 = vmax.f32 %v1553_v29, 0.0  ;;  %v1556_v37 = vsub.f32 %v1343_v31, %v1456_v25  ;;  %v1130_v38 = vpop.f32.mrf.mxu0  ;;  %v1472_v25 = vld [vmem:[#allocation3 + $0x2f0] sm:$0xff] }
 0x304   : > { %v1345_v39 = vpop.f32.mrf.mxu1  ;;  %1751 = vst [vmem:[#allocation8 + $0x248] sm:$0xff] %v1651_v34  ;;  %v1654_v42 = vmax.f32 %v1554_v36, 0.0  ;;  %v1555_v44 = vsub.f32 %v1130_v38, %v1455_v32  ;;  %v1471_v32 = vld [vmem:[#allocation3 + $0x2e8] sm:$0xff] }
 0x305   : > { %1753 = vst [vmem:[#allocation8 + $0x258] sm:$0xff] %v1653_v35  ;;  %v1656_v43 = vmax.f32 %v1556_v37, 0.0  ;;  %v1557_v45 = vsub.f32 %v1345_v39, %v1457_v33  ;;  %v1134_v46 = vpop.f32.mrf.mxu0  ;;  %v1473_v33 = vld [vmem:[#allocation3 + $0x2f8] sm:$0xff] }
 0x306   : > { %v1349_v47 = vpop.f32.mrf.mxu1  ;;  %1754 = vst [vmem:[#allocation8 + $0x260] sm:$0xff] %v1654_v42  ;;  %v1655_v50 = vmax.f32 %v1555_v44, 0.0  ;;  %v1558_v52 = vsub.f32 %v1134_v46, %v1458_v40  ;;  %v1474_v40 = vld [vmem:[#allocation3 + $0x300] sm:$0xff] }
 0x307   : > { %1756 = vst [vmem:[#allocation8 + $0x270] sm:$0xff] %v1656_v43  ;;  %v1657_v51 = vmax.f32 %v1557_v45, 0.0  ;;  %v1560_v53 = vsub.f32 %v1349_v47, %v1460_v41  ;;  %v1136_v54 = vpop.f32.mrf.mxu0  ;;  %v1476_v41 = vld [vmem:[#allocation3 + $0x310] sm:$0xff] }
 0x308   : > { %v1351_v55 = vpop.f32.mrf.mxu1  ;;  %1755 = vst [vmem:[#allocation8 + $0x268] sm:$0xff] %v1655_v50  ;;  %v1658_v58 = vmax.f32 %v1558_v52, 0.0  ;;  %v1559_v60 = vsub.f32 %v1136_v54, %v1459_v48  ;;  %v1475_v48 = vld [vmem:[#allocation3 + $0x308] sm:$0xff] }
 0x309   : > { %1757 = vst [vmem:[#allocation8 + $0x278] sm:$0xff] %v1657_v51  ;;  %v1660_v59 = vmax.f32 %v1560_v53, 0.0  ;;  %v1561_v61 = vsub.f32 %v1351_v55, %v1461_v49  ;;  %v1140_v62 = vpop.f32.mrf.mxu0  ;;  %v1477_v49 = vld [vmem:[#allocation3 + $0x318] sm:$0xff] }
 0x30a   : > { %v1355_v63 = vpop.f32.mrf.mxu1  ;;  %1758 = vst [vmem:[#allocation8 + $0x280] sm:$0xff] %v1658_v58  ;;  %v1659_v2 = vmax.f32 %v1559_v60, 0.0  ;;  %v1562_v5 = vsub.f32 %v1140_v62, %v1462_v56 }
 0x30b   : > { %1760 = vst [vmem:[#allocation8 + $0x290] sm:$0xff] %v1660_v59  ;;  %v1661_v4 = vmax.f32 %v1561_v61, 0.0  ;;  %v1564_v6 = vsub.f32 %v1355_v63, %v1464_v57  ;;  %v1142_v7 = vpop.f32.mrf.mxu0 }
 0x30c   : > { %v1357_v8 = vpop.f32.mrf.mxu1  ;;  %1759 = vst [vmem:[#allocation8 + $0x288] sm:$0xff] %v1659_v2  ;;  %v1662_v11 = vmax.f32 %v1562_v5, 0.0  ;;  %v1563_v3 = vsub.f32 %v1142_v7, %v1463_v0 }
 0x30d   : > { %1761 = vst [vmem:[#allocation8 + $0x298] sm:$0xff] %v1661_v4  ;;  %v1664_v12 = vmax.f32 %v1564_v6, 0.0  ;;  %v1565_v13 = vsub.f32 %v1357_v8, %v1465_v1  ;;  %v1146_v14 = vpop.f32.mrf.mxu0 }
 0x30e   : > { %v1361_v15 = vpop.f32.mrf.mxu1  ;;  %1762 = vst [vmem:[#allocation8 + $0x2a0] sm:$0xff] %v1662_v11  ;;  %v1663_v18 = vmax.f32 %v1563_v3, 0.0  ;;  %v1566_v20 = vsub.f32 %v1146_v14, %v1466_v9 }
 0x30f   : > { %1764 = vst [vmem:[#allocation8 + $0x2b0] sm:$0xff] %v1664_v12  ;;  %v1665_v19 = vmax.f32 %v1565_v13, 0.0  ;;  %v1568_v21 = vsub.f32 %v1361_v15, %v1468_v10  ;;  %v1148_v22 = vpop.f32.mrf.mxu0 }
 0x310   : > { %v1363_v23 = vpop.f32.mrf.mxu1  ;;  %1763 = vst [vmem:[#allocation8 + $0x2a8] sm:$0xff] %v1663_v18  ;;  %v1666_v26 = vmax.f32 %v1566_v20, 0.0  ;;  %v1567_v28 = vsub.f32 %v1148_v22, %v1467_v16 }
 0x311   : > { %1765 = vst [vmem:[#allocation8 + $0x2b8] sm:$0xff] %v1665_v19  ;;  %v1668_v27 = vmax.f32 %v1568_v21, 0.0  ;;  %v1569_v29 = vsub.f32 %v1363_v23, %v1469_v17  ;;  %v1152_v30 = vpop.f32.mrf.mxu0 }
 0x312   : > { %v1367_v31 = vpop.f32.mrf.mxu1  ;;  %1766 = vst [vmem:[#allocation8 + $0x2c0] sm:$0xff] %v1666_v26  ;;  %v1667_v34 = vmax.f32 %v1567_v28, 0.0  ;;  %v1570_v36 = vsub.f32 %v1152_v30, %v1470_v24 }
 0x313   : > { %1768 = vst [vmem:[#allocation8 + $0x2d0] sm:$0xff] %v1668_v27  ;;  %v1669_v35 = vmax.f32 %v1569_v29, 0.0  ;;  %v1572_v37 = vsub.f32 %v1367_v31, %v1472_v25  ;;  %v1154_v38 = vpop.f32.mrf.mxu0 }
 0x314   : > { %v1369_v39 = vpop.f32.mrf.mxu1  ;;  %1767 = vst [vmem:[#allocation8 + $0x2c8] sm:$0xff] %v1667_v34  ;;  %v1670_v42 = vmax.f32 %v1570_v36, 0.0  ;;  %v1571_v44 = vsub.f32 %v1154_v38, %v1471_v32 }
 0x315   : > { %1769 = vst [vmem:[#allocation8 + $0x2d8] sm:$0xff] %v1669_v35  ;;  %v1672_v43 = vmax.f32 %v1572_v37, 0.0  ;;  %v1573_v45 = vsub.f32 %v1369_v39, %v1473_v33  ;;  %v1158_v46 = vpop.f32.mrf.mxu0 }
 0x316   : > { %v1373_v47 = vpop.f32.mrf.mxu1  ;;  %1770 = vst [vmem:[#allocation8 + $0x2e0] sm:$0xff] %v1670_v42  ;;  %v1671_v50 = vmax.f32 %v1571_v44, 0.0  ;;  %v1574_v52 = vsub.f32 %v1158_v46, %v1474_v40 }
 0x317   : > { %1772 = vst [vmem:[#allocation8 + $0x2f0] sm:$0xff] %v1672_v43  ;;  %v1673_v51 = vmax.f32 %v1573_v45, 0.0  ;;  %v1576_v53 = vsub.f32 %v1373_v47, %v1476_v41  ;;  %v1160_v54 = vpop.f32.mrf.mxu0 }
 0x318   : > { %v1375_v55 = vpop.f32.mrf.mxu1  ;;  %1771 = vst [vmem:[#allocation8 + $0x2e8] sm:$0xff] %v1671_v50  ;;  %v1674_v56 = vmax.f32 %v1574_v52, 0.0  ;;  %v1575_v58 = vsub.f32 %v1160_v54, %v1475_v48 }
 0x319   : > { %1773 = vst [vmem:[#allocation8 + $0x2f8] sm:$0xff] %v1673_v51  ;;  %v1676_v57 = vmax.f32 %v1576_v53, 0.0  ;;  %v1577_v59 = vsub.f32 %v1375_v55, %v1477_v49 }
 0x31a   : > { %1774 = vst [vmem:[#allocation8 + $0x300] sm:$0xff] %v1674_v56  ;;  %v1675_v60 = vmax.f32 %v1575_v58, 0.0 }
 0x31b   : > { %1776 = vst [vmem:[#allocation8 + $0x310] sm:$0xff] %v1676_v57  ;;  %v1677_v61 = vmax.f32 %v1577_v59, 0.0 }
 0x31c   : > { %1775 = vst [vmem:[#allocation8 + $0x308] sm:$0xff] %v1675_v60 }
 0x31d   : > { %1777 = vst [vmem:[#allocation8 + $0x318] sm:$0xff] %v1677_v61 }
 0x31e PF: > { %p2415_p6 = scmp.eq.s32.totalorder %s1889_s12, 1  ;;  %s2254_s5 = smov [#allocation8]  }
 0x31f   : > { %s1796_s6 = sshll.u32 %s2254_s5, 4  ;;  %s1797_s6 = int_to_ptr.vmem [resolvable:$true] %s1796_s6 }
 0x320   : > { %s2186_s7 = scalar_lea.vmem %s1797_s6, 12800  ;;  %s2192_s8 = scalar_lea.vmem %s1797_s6, 25600 }
 0x321   : > { %p2187_p12 = scmp.ne.s32.totalorder %s1797_s6, %s2186_s7  ;;  %p2193_p1 = scmp.lt.s32.totalorder %s1797_s6, %s1797_s6 }
 0x322   : > { %p2194_p2 = scmp.lt.s32.totalorder %s2192_s8, %s2186_s7 }
 0x323   : > { %p2188_p13 = pnand %p2187_p12, %p2415_p6 }
 0x324   : > { %p2195_p5 = por %p2194_p2, %p2193_p1 }
 0x325   : > { %p2189_p0 = pneg %p2188_p13 }
 0x327   : > { %p2196_p8 = pnand %p2195_p5, %p2189_p0 }
 0x329   : > { %2199 = shalt.err (!%p2196_p8)
}
 0x32a   : > { %s2255_s9 = smov 512   ;;  %s2256_s12 = smov 32  }
 0x32b   : > { %2078 = dma.vmem_to_hbm [thread:$0]  (%p2415_p6), %s1797_s6, 12800, %s2440_s2, [#allocation5], %s2255_s9, %s2255_s9, %s2256_s12  }
 0x32c PF: > { %p2097_p9 = scmp.ge.s32.totalorder %s2244_s11, 2  ;;  %p2098_p11 = scmp.eq.s32.totalorder %s1890_s13, 1 }
 0x32e   : > { %p2089_p10 = pnand %p2098_p11, %p2097_p9 }
 0x330   : > { %p2090_p7 = pneg %p2089_p10 }
 0x332   : > { %2231 = dma.done.wait (%p2090_p7), [#allocation5], 12800  }
 0x333   : > { %2233 = vsyncadd (%p2090_p7), [#allocation5], 4294954496  ;;  %s17_s11 = sadd.s32 1, %s2244_s11   ;;  %s2445_s9 = smov %s2240_s10 }
 0x334   : > { %p14_p3 = scmp.ge.s32.totalorder %s17_s11, 4   ;;  %s2446_s10 = smov %s2448_s14 }
 0x336   :  { %16 = sbr.rel (!%p14_p3) target bundleno = 5 (0x5), region = 83 }
 0x33b   :  { %1817 = vsyncpa [#allocation4], 1 }
 0x33c   :  { %1819 = vsyncpa [#allocation4 + $0x1], 1 }
 0x33d   :  { %1820 = vsyncpa [#allocation7], 1 }
 0x33e   :  { %1821 = vsyncpa [#allocation5], 1 }
 0x33f   :  { %1823 = vsyncpa [#allocation5 + $0x1], 1 }

</bundles_post_ra>
